<compile_context>
chip_gen: v6e
topology: v6e:2x2x1
jax: 0.10.0
libtpu: 0.0.40
codegen_flags: <defaults>
</compile_context>

<pallas_src>
import functools

import jax
import jax.numpy as jnp
from jax import lax
from jax.experimental import pallas as pl
from jax.experimental.pallas import tpu as pltpu

_LAYER_DIMS = ((8, 6), (6, 4), (4, 2), (2, 1))
_N_PARAMS = sum(fin * fout + fout for fin, fout in _LAYER_DIMS)  # 95

_LANE = 128                 # lane width (batch rides lanes)
_CM = 16                    # batch sublane-rows per inner-loop step (16*128 = 2048 samples)
_MIN_BLOCK = _CM * _LANE    # 2048 samples; keeps bm a multiple of _CM


def _round_up(n, m):
    return ((n + m - 1) // m) * m


def _sigmoid(z):
    # exp on the EUP + approximate reciprocal on the EUP; keeps the divide off the
    # (binding) VALU slot.  ~1e-4-level relative error vs an exact divide.
    return pl.reciprocal(1.0 + jnp.exp(-z), approx=True)


def mlp_kernel(params_ref, x_ref, o_ref):
    # params_ref: SMEM f32[95]            (all weights + biases, packed)
    # x_ref:      VMEM f32[8, bm, 128]    (feature, batch-sublane, batch-lane)
    # o_ref:      VMEM f32[bm, 128]       (lane-dense output slab)
    fin0 = _LAYER_DIMS[0][0]
    bm = o_ref.shape[0]
    n_chunks = bm // _CM

    # Hoist all 95 SMEM scalar loads out of the inner chunk loop: issued once per
    # grid step, they hide under the (much larger) per-chunk VPU work.
    wb = [params_ref[i] for i in range(_N_PARAMS)]

    def chunk(c, carry):
        s = pl.multiple_of(c * _CM, _CM)
        # 8 fully packed (_CM, 128) feature tiles for this 2048-sample chunk.
        h = [x_ref[k, pl.ds(s, _CM), :] for k in range(fin0)]

        off = 0
        for fin, fout in _LAYER_DIMS:
            new_h = []
            for j in range(fout):
                # z_j = sum_k W[j, k] * h_k + b_j   (VPU broadcast MACs)
                acc = h[0] * wb[off + j * fin]
                for k in range(1, fin):
                    acc = acc + h[k] * wb[off + j * fin + k]
                acc = acc + wb[off + fin * fout + j]
                new_h.append(_sigmoid(acc))
            h = new_h
            off += fin * fout + fout

        o_ref[pl.ds(s, _CM), :] = h[0]
        return carry

    lax.fori_loop(0, n_chunks, chunk, 0)


def pack_params(params):
    """Pack w1..w4 ((in,out) layout) and b1..b4 ((1,out)) into one flat f32 vector.

    Weights are stored row-major as (fout, fin) so the kernel reads W[j, k] at
    offset + j*fin + k; biases follow each weight block.
    """
    pieces = []
    for i in range(1, 5):
        pieces.append(params[f"w{i}"].T.reshape(-1))  # (fout*fin,) in (fout, fin) order
        pieces.append(params[f"b{i}"].reshape(-1))    # (fout,)
    flat = jnp.concatenate(pieces).astype(jnp.float32)
    assert flat.shape == (_N_PARAMS,)
    return flat


@functools.partial(jax.jit, static_argnames=("block_n",))
def mlp_forward(x, params, *, block_n=32768):
    """x: (N, 8) float32. params: dict of w1..w4 (in,out) and b1..b4 (1,out) -> (N, 1)."""
    N, fin = x.shape
    assert fin == _LAYER_DIMS[0][0]

    # Block sizing: multiples of 2048 samples (so the 3-D tile is (8, 16k, 128)),
    # capped at ~ceil(N/4) so large batches give >= 4 grid blocks (feeds both v7x
    # TensorCores), and at block_n to bound the double-buffered VMEM footprint.
    block_n = max(_MIN_BLOCK, (block_n // _MIN_BLOCK) * _MIN_BLOCK)
    bn = min(block_n, _round_up(max(-(-N // 4), 1), _MIN_BLOCK))
    n_pad = _round_up(N, bn)
    bm = bn // _LANE                         # batch sublane-rows per block (mult. of 16)

    flat_params = pack_params(params)

    # Lay the batch out as (feature, sublane, lane).  This is one pad + transpose;
    # a production producer should emit this layout directly to skip the round trip.
    xp = jnp.zeros((n_pad, fin), jnp.float32).at[:N, :].set(x.astype(jnp.float32))
    xt = xp.reshape(n_pad // _LANE, _LANE, fin).transpose(2, 0, 1)  # (8, n_pad//128, 128)

    out = pl.pallas_call(
        mlp_kernel,
        out_shape=jax.ShapeDtypeStruct((n_pad // _LANE, _LANE), jnp.float32),
        grid=(n_pad // bn,),
        in_specs=[
            pl.BlockSpec(memory_space=pltpu.MemorySpace.SMEM),      # packed params (1 DMA)
            pl.BlockSpec((fin, bm, _LANE), lambda i: (0, i, 0)),    # streamed batch tile
        ],
        out_specs=pl.BlockSpec((bm, _LANE), lambda i: (i, 0)),      # lane-dense output tile
        compiler_params=pltpu.CompilerParams(
            dimension_semantics=("parallel",),
        ),
    )(flat_params, xt)

    return out.reshape(n_pad)[:N].reshape(N, 1)


def init_params(key):
    # Deterministic init mimicking torch.nn.Linear default (uniform(-1/sqrt(in), 1/sqrt(in))).
    params = {}
    for i, (fin, fout) in enumerate(_LAYER_DIMS, start=1):
        key, kw, kb = jax.random.split(key, 3)
        bound = 1.0 / jnp.sqrt(jnp.float32(fin))
        params[f"w{i}"] = jax.random.uniform(kw, (fin, fout), jnp.float32, -bound, bound)
        params[f"b{i}"] = jax.random.uniform(kb, (1, fout), jnp.float32, -bound, bound)
    return params


def reference_forward(x, params):
    h = x
    for i in range(1, 5):
        z = jnp.dot(h, params[f"w{i}"], precision=lax.Precision.HIGHEST)
        h = jax.nn.sigmoid(z + params[f"b{i}"])
    return h


if __name__ == "__main__":
    key = jax.random.PRNGKey(0)
    key, kx1, kx2 = jax.random.split(key, 3)
    params = init_params(key)

    # Small batch (as in the original module usage): single block, single inner chunk.
    x_small = jax.random.normal(kx1, (8, 8), jnp.float32)
    out_small = jax.block_until_ready(mlp_forward(x_small, params))
    ref_small = reference_forward(x_small, params)
    assert out_small.shape == (8, 1)
    # approx reciprocal in the sigmoid -> slightly looser tolerance than exact divide.
    assert jnp.allclose(out_small, ref_small, atol=5e-3, rtol=5e-3), "mismatch (small batch)"

    # Moderate batch spanning several grid blocks (exercises pipelining / megacore path).
    x_big = jax.random.normal(kx2, (5000, 8), jnp.float32)
    out_big = jax.block_until_ready(mlp_forward(x_big, params))
    ref_big = reference_forward(x_big, params)
    assert out_big.shape == (5000, 1)
    assert jnp.allclose(out_big, ref_big, atol=5e-3, rtol=5e-3), "mismatch (multi-block batch)"

    print("KERNEL_OK")
</pallas_src>

<mosaic_0001>
module attributes {stable_mosaic.version = 11 : i64} {
  func.func @mlp_kernel(%arg0: i32, %arg1: memref<95xf32, #tpu.memory_space<smem>>, %arg2: memref<8x16x128xf32, #tpu.memory_space<vmem>>, %arg3: memref<16x128xf32, #tpu.memory_space<vmem>>) attributes {dimension_semantics = [#tpu.dimension_semantics<parallel>], iteration_bounds = array<i64: 1>, scalar_prefetch = 0 : i64, scratch_operands = 0 : i64, tpu.core_type = #tpu.core_type<tc>, window_params = [{transform_indices = @transform_0, window_bounds = array<i64: 95>}, {transform_indices = @transform_1, window_bounds = array<i64: 8, 16, 128>}, {transform_indices = @transform_2, window_bounds = array<i64: 16, 128>}]} {
    %c0 = arith.constant 0 : index
    %0 = memref.load %arg1[%c0] : memref<95xf32, #tpu.memory_space<smem>>
    %c1 = arith.constant 1 : index
    %1 = memref.load %arg1[%c1] : memref<95xf32, #tpu.memory_space<smem>>
    %c2 = arith.constant 2 : index
    %2 = memref.load %arg1[%c2] : memref<95xf32, #tpu.memory_space<smem>>
    %c3 = arith.constant 3 : index
    %3 = memref.load %arg1[%c3] : memref<95xf32, #tpu.memory_space<smem>>
    %c4 = arith.constant 4 : index
    %4 = memref.load %arg1[%c4] : memref<95xf32, #tpu.memory_space<smem>>
    %c5 = arith.constant 5 : index
    %5 = memref.load %arg1[%c5] : memref<95xf32, #tpu.memory_space<smem>>
    %c6 = arith.constant 6 : index
    %6 = memref.load %arg1[%c6] : memref<95xf32, #tpu.memory_space<smem>>
    %c7 = arith.constant 7 : index
    %7 = memref.load %arg1[%c7] : memref<95xf32, #tpu.memory_space<smem>>
    %c8 = arith.constant 8 : index
    %8 = memref.load %arg1[%c8] : memref<95xf32, #tpu.memory_space<smem>>
    %c9 = arith.constant 9 : index
    %9 = memref.load %arg1[%c9] : memref<95xf32, #tpu.memory_space<smem>>
    %c10 = arith.constant 10 : index
    %10 = memref.load %arg1[%c10] : memref<95xf32, #tpu.memory_space<smem>>
    %c11 = arith.constant 11 : index
    %11 = memref.load %arg1[%c11] : memref<95xf32, #tpu.memory_space<smem>>
    %c12 = arith.constant 12 : index
    %12 = memref.load %arg1[%c12] : memref<95xf32, #tpu.memory_space<smem>>
    %c13 = arith.constant 13 : index
    %13 = memref.load %arg1[%c13] : memref<95xf32, #tpu.memory_space<smem>>
    %c14 = arith.constant 14 : index
    %14 = memref.load %arg1[%c14] : memref<95xf32, #tpu.memory_space<smem>>
    %c15 = arith.constant 15 : index
    %15 = memref.load %arg1[%c15] : memref<95xf32, #tpu.memory_space<smem>>
    %c16 = arith.constant 16 : index
    %16 = memref.load %arg1[%c16] : memref<95xf32, #tpu.memory_space<smem>>
    %c17 = arith.constant 17 : index
    %17 = memref.load %arg1[%c17] : memref<95xf32, #tpu.memory_space<smem>>
    %c18 = arith.constant 18 : index
    %18 = memref.load %arg1[%c18] : memref<95xf32, #tpu.memory_space<smem>>
    %c19 = arith.constant 19 : index
    %19 = memref.load %arg1[%c19] : memref<95xf32, #tpu.memory_space<smem>>
    %c20 = arith.constant 20 : index
    %20 = memref.load %arg1[%c20] : memref<95xf32, #tpu.memory_space<smem>>
    %c21 = arith.constant 21 : index
    %21 = memref.load %arg1[%c21] : memref<95xf32, #tpu.memory_space<smem>>
    %c22 = arith.constant 22 : index
    %22 = memref.load %arg1[%c22] : memref<95xf32, #tpu.memory_space<smem>>
    %c23 = arith.constant 23 : index
    %23 = memref.load %arg1[%c23] : memref<95xf32, #tpu.memory_space<smem>>
    %c24 = arith.constant 24 : index
    %24 = memref.load %arg1[%c24] : memref<95xf32, #tpu.memory_space<smem>>
    %c25 = arith.constant 25 : index
    %25 = memref.load %arg1[%c25] : memref<95xf32, #tpu.memory_space<smem>>
    %c26 = arith.constant 26 : index
    %26 = memref.load %arg1[%c26] : memref<95xf32, #tpu.memory_space<smem>>
    %c27 = arith.constant 27 : index
    %27 = memref.load %arg1[%c27] : memref<95xf32, #tpu.memory_space<smem>>
    %c28 = arith.constant 28 : index
    %28 = memref.load %arg1[%c28] : memref<95xf32, #tpu.memory_space<smem>>
    %c29 = arith.constant 29 : index
    %29 = memref.load %arg1[%c29] : memref<95xf32, #tpu.memory_space<smem>>
    %c30 = arith.constant 30 : index
    %30 = memref.load %arg1[%c30] : memref<95xf32, #tpu.memory_space<smem>>
    %c31 = arith.constant 31 : index
    %31 = memref.load %arg1[%c31] : memref<95xf32, #tpu.memory_space<smem>>
    %c32 = arith.constant 32 : index
    %32 = memref.load %arg1[%c32] : memref<95xf32, #tpu.memory_space<smem>>
    %c33 = arith.constant 33 : index
    %33 = memref.load %arg1[%c33] : memref<95xf32, #tpu.memory_space<smem>>
    %c34 = arith.constant 34 : index
    %34 = memref.load %arg1[%c34] : memref<95xf32, #tpu.memory_space<smem>>
    %c35 = arith.constant 35 : index
    %35 = memref.load %arg1[%c35] : memref<95xf32, #tpu.memory_space<smem>>
    %c36 = arith.constant 36 : index
    %36 = memref.load %arg1[%c36] : memref<95xf32, #tpu.memory_space<smem>>
    %c37 = arith.constant 37 : index
    %37 = memref.load %arg1[%c37] : memref<95xf32, #tpu.memory_space<smem>>
    %c38 = arith.constant 38 : index
    %38 = memref.load %arg1[%c38] : memref<95xf32, #tpu.memory_space<smem>>
    %c39 = arith.constant 39 : index
    %39 = memref.load %arg1[%c39] : memref<95xf32, #tpu.memory_space<smem>>
    %c40 = arith.constant 40 : index
    %40 = memref.load %arg1[%c40] : memref<95xf32, #tpu.memory_space<smem>>
    %c41 = arith.constant 41 : index
    %41 = memref.load %arg1[%c41] : memref<95xf32, #tpu.memory_space<smem>>
    %c42 = arith.constant 42 : index
    %42 = memref.load %arg1[%c42] : memref<95xf32, #tpu.memory_space<smem>>
    %c43 = arith.constant 43 : index
    %43 = memref.load %arg1[%c43] : memref<95xf32, #tpu.memory_space<smem>>
    %c44 = arith.constant 44 : index
    %44 = memref.load %arg1[%c44] : memref<95xf32, #tpu.memory_space<smem>>
    %c45 = arith.constant 45 : index
    %45 = memref.load %arg1[%c45] : memref<95xf32, #tpu.memory_space<smem>>
    %c46 = arith.constant 46 : index
    %46 = memref.load %arg1[%c46] : memref<95xf32, #tpu.memory_space<smem>>
    %c47 = arith.constant 47 : index
    %47 = memref.load %arg1[%c47] : memref<95xf32, #tpu.memory_space<smem>>
    %c48 = arith.constant 48 : index
    %48 = memref.load %arg1[%c48] : memref<95xf32, #tpu.memory_space<smem>>
    %c49 = arith.constant 49 : index
    %49 = memref.load %arg1[%c49] : memref<95xf32, #tpu.memory_space<smem>>
    %c50 = arith.constant 50 : index
    %50 = memref.load %arg1[%c50] : memref<95xf32, #tpu.memory_space<smem>>
    %c51 = arith.constant 51 : index
    %51 = memref.load %arg1[%c51] : memref<95xf32, #tpu.memory_space<smem>>
    %c52 = arith.constant 52 : index
    %52 = memref.load %arg1[%c52] : memref<95xf32, #tpu.memory_space<smem>>
    %c53 = arith.constant 53 : index
    %53 = memref.load %arg1[%c53] : memref<95xf32, #tpu.memory_space<smem>>
    %c54 = arith.constant 54 : index
    %54 = memref.load %arg1[%c54] : memref<95xf32, #tpu.memory_space<smem>>
    %c55 = arith.constant 55 : index
    %55 = memref.load %arg1[%c55] : memref<95xf32, #tpu.memory_space<smem>>
    %c56 = arith.constant 56 : index
    %56 = memref.load %arg1[%c56] : memref<95xf32, #tpu.memory_space<smem>>
    %c57 = arith.constant 57 : index
    %57 = memref.load %arg1[%c57] : memref<95xf32, #tpu.memory_space<smem>>
    %c58 = arith.constant 58 : index
    %58 = memref.load %arg1[%c58] : memref<95xf32, #tpu.memory_space<smem>>
    %c59 = arith.constant 59 : index
    %59 = memref.load %arg1[%c59] : memref<95xf32, #tpu.memory_space<smem>>
    %c60 = arith.constant 60 : index
    %60 = memref.load %arg1[%c60] : memref<95xf32, #tpu.memory_space<smem>>
    %c61 = arith.constant 61 : index
    %61 = memref.load %arg1[%c61] : memref<95xf32, #tpu.memory_space<smem>>
    %c62 = arith.constant 62 : index
    %62 = memref.load %arg1[%c62] : memref<95xf32, #tpu.memory_space<smem>>
    %c63 = arith.constant 63 : index
    %63 = memref.load %arg1[%c63] : memref<95xf32, #tpu.memory_space<smem>>
    %c64 = arith.constant 64 : index
    %64 = memref.load %arg1[%c64] : memref<95xf32, #tpu.memory_space<smem>>
    %c65 = arith.constant 65 : index
    %65 = memref.load %arg1[%c65] : memref<95xf32, #tpu.memory_space<smem>>
    %c66 = arith.constant 66 : index
    %66 = memref.load %arg1[%c66] : memref<95xf32, #tpu.memory_space<smem>>
    %c67 = arith.constant 67 : index
    %67 = memref.load %arg1[%c67] : memref<95xf32, #tpu.memory_space<smem>>
    %c68 = arith.constant 68 : index
    %68 = memref.load %arg1[%c68] : memref<95xf32, #tpu.memory_space<smem>>
    %c69 = arith.constant 69 : index
    %69 = memref.load %arg1[%c69] : memref<95xf32, #tpu.memory_space<smem>>
    %c70 = arith.constant 70 : index
    %70 = memref.load %arg1[%c70] : memref<95xf32, #tpu.memory_space<smem>>
    %c71 = arith.constant 71 : index
    %71 = memref.load %arg1[%c71] : memref<95xf32, #tpu.memory_space<smem>>
    %c72 = arith.constant 72 : index
    %72 = memref.load %arg1[%c72] : memref<95xf32, #tpu.memory_space<smem>>
    %c73 = arith.constant 73 : index
    %73 = memref.load %arg1[%c73] : memref<95xf32, #tpu.memory_space<smem>>
    %c74 = arith.constant 74 : index
    %74 = memref.load %arg1[%c74] : memref<95xf32, #tpu.memory_space<smem>>
    %c75 = arith.constant 75 : index
    %75 = memref.load %arg1[%c75] : memref<95xf32, #tpu.memory_space<smem>>
    %c76 = arith.constant 76 : index
    %76 = memref.load %arg1[%c76] : memref<95xf32, #tpu.memory_space<smem>>
    %c77 = arith.constant 77 : index
    %77 = memref.load %arg1[%c77] : memref<95xf32, #tpu.memory_space<smem>>
    %c78 = arith.constant 78 : index
    %78 = memref.load %arg1[%c78] : memref<95xf32, #tpu.memory_space<smem>>
    %c79 = arith.constant 79 : index
    %79 = memref.load %arg1[%c79] : memref<95xf32, #tpu.memory_space<smem>>
    %c80 = arith.constant 80 : index
    %80 = memref.load %arg1[%c80] : memref<95xf32, #tpu.memory_space<smem>>
    %c81 = arith.constant 81 : index
    %81 = memref.load %arg1[%c81] : memref<95xf32, #tpu.memory_space<smem>>
    %c82 = arith.constant 82 : index
    %82 = memref.load %arg1[%c82] : memref<95xf32, #tpu.memory_space<smem>>
    %c83 = arith.constant 83 : index
    %83 = memref.load %arg1[%c83] : memref<95xf32, #tpu.memory_space<smem>>
    %c84 = arith.constant 84 : index
    %84 = memref.load %arg1[%c84] : memref<95xf32, #tpu.memory_space<smem>>
    %c85 = arith.constant 85 : index
    %85 = memref.load %arg1[%c85] : memref<95xf32, #tpu.memory_space<smem>>
    %c86 = arith.constant 86 : index
    %86 = memref.load %arg1[%c86] : memref<95xf32, #tpu.memory_space<smem>>
    %c87 = arith.constant 87 : index
    %87 = memref.load %arg1[%c87] : memref<95xf32, #tpu.memory_space<smem>>
    %c88 = arith.constant 88 : index
    %88 = memref.load %arg1[%c88] : memref<95xf32, #tpu.memory_space<smem>>
    %c89 = arith.constant 89 : index
    %89 = memref.load %arg1[%c89] : memref<95xf32, #tpu.memory_space<smem>>
    %c90 = arith.constant 90 : index
    %90 = memref.load %arg1[%c90] : memref<95xf32, #tpu.memory_space<smem>>
    %c91 = arith.constant 91 : index
    %91 = memref.load %arg1[%c91] : memref<95xf32, #tpu.memory_space<smem>>
    %c92 = arith.constant 92 : index
    %92 = memref.load %arg1[%c92] : memref<95xf32, #tpu.memory_space<smem>>
    %c93 = arith.constant 93 : index
    %93 = memref.load %arg1[%c93] : memref<95xf32, #tpu.memory_space<smem>>
    %c94 = arith.constant 94 : index
    %94 = memref.load %arg1[%c94] : memref<95xf32, #tpu.memory_space<smem>>
    %c0_i32 = arith.constant 0 : i32
    %c16_i32 = arith.constant 16 : i32
    %95 = arith.muli %c0_i32, %c16_i32 : i32
    %96 = tpu.assume_multiple %95, 16 : i32
    %c0_0 = arith.constant 0 : index
    %97 = arith.index_cast %96 : i32 to index
    %c0_1 = arith.constant 0 : index
    %98 = vector.load %arg2[%c0_0, %97, %c0_1] : memref<8x16x128xf32, #tpu.memory_space<vmem>>, vector<1x16x128xf32>
    %99 = vector.shape_cast %98 : vector<1x16x128xf32> to vector<16x128xf32>
    %c1_2 = arith.constant 1 : index
    %100 = arith.index_cast %96 : i32 to index
    %c0_3 = arith.constant 0 : index
    %101 = vector.load %arg2[%c1_2, %100, %c0_3] : memref<8x16x128xf32, #tpu.memory_space<vmem>>, vector<1x16x128xf32>
    %102 = vector.shape_cast %101 : vector<1x16x128xf32> to vector<16x128xf32>
    %c2_4 = arith.constant 2 : index
    %103 = arith.index_cast %96 : i32 to index
    %c0_5 = arith.constant 0 : index
    %104 = vector.load %arg2[%c2_4, %103, %c0_5] : memref<8x16x128xf32, #tpu.memory_space<vmem>>, vector<1x16x128xf32>
    %105 = vector.shape_cast %104 : vector<1x16x128xf32> to vector<16x128xf32>
    %c3_6 = arith.constant 3 : index
    %106 = arith.index_cast %96 : i32 to index
    %c0_7 = arith.constant 0 : index
    %107 = vector.load %arg2[%c3_6, %106, %c0_7] : memref<8x16x128xf32, #tpu.memory_space<vmem>>, vector<1x16x128xf32>
    %108 = vector.shape_cast %107 : vector<1x16x128xf32> to vector<16x128xf32>
    %c4_8 = arith.constant 4 : index
    %109 = arith.index_cast %96 : i32 to index
    %c0_9 = arith.constant 0 : index
    %110 = vector.load %arg2[%c4_8, %109, %c0_9] : memref<8x16x128xf32, #tpu.memory_space<vmem>>, vector<1x16x128xf32>
    %111 = vector.shape_cast %110 : vector<1x16x128xf32> to vector<16x128xf32>
    %c5_10 = arith.constant 5 : index
    %112 = arith.index_cast %96 : i32 to index
    %c0_11 = arith.constant 0 : index
    %113 = vector.load %arg2[%c5_10, %112, %c0_11] : memref<8x16x128xf32, #tpu.memory_space<vmem>>, vector<1x16x128xf32>
    %114 = vector.shape_cast %113 : vector<1x16x128xf32> to vector<16x128xf32>
    %c6_12 = arith.constant 6 : index
    %115 = arith.index_cast %96 : i32 to index
    %c0_13 = arith.constant 0 : index
    %116 = vector.load %arg2[%c6_12, %115, %c0_13] : memref<8x16x128xf32, #tpu.memory_space<vmem>>, vector<1x16x128xf32>
    %117 = vector.shape_cast %116 : vector<1x16x128xf32> to vector<16x128xf32>
    %c7_14 = arith.constant 7 : index
    %118 = arith.index_cast %96 : i32 to index
    %c0_15 = arith.constant 0 : index
    %119 = vector.load %arg2[%c7_14, %118, %c0_15] : memref<8x16x128xf32, #tpu.memory_space<vmem>>, vector<1x16x128xf32>
    %120 = vector.shape_cast %119 : vector<1x16x128xf32> to vector<16x128xf32>
    %121 = vector.broadcast %0 : f32 to vector<16x128xf32>
    %122 = arith.mulf %99, %121 : vector<16x128xf32>
    %123 = vector.broadcast %1 : f32 to vector<16x128xf32>
    %124 = arith.mulf %102, %123 : vector<16x128xf32>
    %125 = arith.addf %122, %124 : vector<16x128xf32>
    %126 = vector.broadcast %2 : f32 to vector<16x128xf32>
    %127 = arith.mulf %105, %126 : vector<16x128xf32>
    %128 = arith.addf %125, %127 : vector<16x128xf32>
    %129 = vector.broadcast %3 : f32 to vector<16x128xf32>
    %130 = arith.mulf %108, %129 : vector<16x128xf32>
    %131 = arith.addf %128, %130 : vector<16x128xf32>
    %132 = vector.broadcast %4 : f32 to vector<16x128xf32>
    %133 = arith.mulf %111, %132 : vector<16x128xf32>
    %134 = arith.addf %131, %133 : vector<16x128xf32>
    %135 = vector.broadcast %5 : f32 to vector<16x128xf32>
    %136 = arith.mulf %114, %135 : vector<16x128xf32>
    %137 = arith.addf %134, %136 : vector<16x128xf32>
    %138 = vector.broadcast %6 : f32 to vector<16x128xf32>
    %139 = arith.mulf %117, %138 : vector<16x128xf32>
    %140 = arith.addf %137, %139 : vector<16x128xf32>
    %141 = vector.broadcast %7 : f32 to vector<16x128xf32>
    %142 = arith.mulf %120, %141 : vector<16x128xf32>
    %143 = arith.addf %140, %142 : vector<16x128xf32>
    %144 = vector.broadcast %48 : f32 to vector<16x128xf32>
    %145 = arith.addf %143, %144 : vector<16x128xf32>
    %cst = arith.constant 0.000000e+00 : f32
    %146 = vector.broadcast %cst : f32 to vector<16x128xf32>
    %147 = arith.subf %146, %145 : vector<16x128xf32>
    %148 = math.exp %147 : vector<16x128xf32>
    %cst_16 = arith.constant 1.000000e+00 : f32
    %149 = vector.broadcast %cst_16 : f32 to vector<16x128xf32>
    %150 = arith.addf %149, %148 : vector<16x128xf32>
    %151 = tpu.reciprocal %150 {approx = true} : vector<16x128xf32> -> vector<16x128xf32>
    %152 = vector.broadcast %8 : f32 to vector<16x128xf32>
    %153 = arith.mulf %99, %152 : vector<16x128xf32>
    %154 = vector.broadcast %9 : f32 to vector<16x128xf32>
    %155 = arith.mulf %102, %154 : vector<16x128xf32>
    %156 = arith.addf %153, %155 : vector<16x128xf32>
    %157 = vector.broadcast %10 : f32 to vector<16x128xf32>
    %158 = arith.mulf %105, %157 : vector<16x128xf32>
    %159 = arith.addf %156, %158 : vector<16x128xf32>
    %160 = vector.broadcast %11 : f32 to vector<16x128xf32>
    %161 = arith.mulf %108, %160 : vector<16x128xf32>
    %162 = arith.addf %159, %161 : vector<16x128xf32>
    %163 = vector.broadcast %12 : f32 to vector<16x128xf32>
    %164 = arith.mulf %111, %163 : vector<16x128xf32>
    %165 = arith.addf %162, %164 : vector<16x128xf32>
    %166 = vector.broadcast %13 : f32 to vector<16x128xf32>
    %167 = arith.mulf %114, %166 : vector<16x128xf32>
    %168 = arith.addf %165, %167 : vector<16x128xf32>
    %169 = vector.broadcast %14 : f32 to vector<16x128xf32>
    %170 = arith.mulf %117, %169 : vector<16x128xf32>
    %171 = arith.addf %168, %170 : vector<16x128xf32>
    %172 = vector.broadcast %15 : f32 to vector<16x128xf32>
    %173 = arith.mulf %120, %172 : vector<16x128xf32>
    %174 = arith.addf %171, %173 : vector<16x128xf32>
    %175 = vector.broadcast %49 : f32 to vector<16x128xf32>
    %176 = arith.addf %174, %175 : vector<16x128xf32>
    %cst_17 = arith.constant 0.000000e+00 : f32
    %177 = vector.broadcast %cst_17 : f32 to vector<16x128xf32>
    %178 = arith.subf %177, %176 : vector<16x128xf32>
    %179 = math.exp %178 : vector<16x128xf32>
    %cst_18 = arith.constant 1.000000e+00 : f32
    %180 = vector.broadcast %cst_18 : f32 to vector<16x128xf32>
    %181 = arith.addf %180, %179 : vector<16x128xf32>
    %182 = tpu.reciprocal %181 {approx = true} : vector<16x128xf32> -> vector<16x128xf32>
    %183 = vector.broadcast %16 : f32 to vector<16x128xf32>
    %184 = arith.mulf %99, %183 : vector<16x128xf32>
    %185 = vector.broadcast %17 : f32 to vector<16x128xf32>
    %186 = arith.mulf %102, %185 : vector<16x128xf32>
    %187 = arith.addf %184, %186 : vector<16x128xf32>
    %188 = vector.broadcast %18 : f32 to vector<16x128xf32>
    %189 = arith.mulf %105, %188 : vector<16x128xf32>
    %190 = arith.addf %187, %189 : vector<16x128xf32>
    %191 = vector.broadcast %19 : f32 to vector<16x128xf32>
    %192 = arith.mulf %108, %191 : vector<16x128xf32>
    %193 = arith.addf %190, %192 : vector<16x128xf32>
    %194 = vector.broadcast %20 : f32 to vector<16x128xf32>
    %195 = arith.mulf %111, %194 : vector<16x128xf32>
    %196 = arith.addf %193, %195 : vector<16x128xf32>
    %197 = vector.broadcast %21 : f32 to vector<16x128xf32>
    %198 = arith.mulf %114, %197 : vector<16x128xf32>
    %199 = arith.addf %196, %198 : vector<16x128xf32>
    %200 = vector.broadcast %22 : f32 to vector<16x128xf32>
    %201 = arith.mulf %117, %200 : vector<16x128xf32>
    %202 = arith.addf %199, %201 : vector<16x128xf32>
    %203 = vector.broadcast %23 : f32 to vector<16x128xf32>
    %204 = arith.mulf %120, %203 : vector<16x128xf32>
    %205 = arith.addf %202, %204 : vector<16x128xf32>
    %206 = vector.broadcast %50 : f32 to vector<16x128xf32>
    %207 = arith.addf %205, %206 : vector<16x128xf32>
    %cst_19 = arith.constant 0.000000e+00 : f32
    %208 = vector.broadcast %cst_19 : f32 to vector<16x128xf32>
    %209 = arith.subf %208, %207 : vector<16x128xf32>
    %210 = math.exp %209 : vector<16x128xf32>
    %cst_20 = arith.constant 1.000000e+00 : f32
    %211 = vector.broadcast %cst_20 : f32 to vector<16x128xf32>
    %212 = arith.addf %211, %210 : vector<16x128xf32>
    %213 = tpu.reciprocal %212 {approx = true} : vector<16x128xf32> -> vector<16x128xf32>
    %214 = vector.broadcast %24 : f32 to vector<16x128xf32>
    %215 = arith.mulf %99, %214 : vector<16x128xf32>
    %216 = vector.broadcast %25 : f32 to vector<16x128xf32>
    %217 = arith.mulf %102, %216 : vector<16x128xf32>
    %218 = arith.addf %215, %217 : vector<16x128xf32>
    %219 = vector.broadcast %26 : f32 to vector<16x128xf32>
    %220 = arith.mulf %105, %219 : vector<16x128xf32>
    %221 = arith.addf %218, %220 : vector<16x128xf32>
    %222 = vector.broadcast %27 : f32 to vector<16x128xf32>
    %223 = arith.mulf %108, %222 : vector<16x128xf32>
    %224 = arith.addf %221, %223 : vector<16x128xf32>
    %225 = vector.broadcast %28 : f32 to vector<16x128xf32>
    %226 = arith.mulf %111, %225 : vector<16x128xf32>
    %227 = arith.addf %224, %226 : vector<16x128xf32>
    %228 = vector.broadcast %29 : f32 to vector<16x128xf32>
    %229 = arith.mulf %114, %228 : vector<16x128xf32>
    %230 = arith.addf %227, %229 : vector<16x128xf32>
    %231 = vector.broadcast %30 : f32 to vector<16x128xf32>
    %232 = arith.mulf %117, %231 : vector<16x128xf32>
    %233 = arith.addf %230, %232 : vector<16x128xf32>
    %234 = vector.broadcast %31 : f32 to vector<16x128xf32>
    %235 = arith.mulf %120, %234 : vector<16x128xf32>
    %236 = arith.addf %233, %235 : vector<16x128xf32>
    %237 = vector.broadcast %51 : f32 to vector<16x128xf32>
    %238 = arith.addf %236, %237 : vector<16x128xf32>
    %cst_21 = arith.constant 0.000000e+00 : f32
    %239 = vector.broadcast %cst_21 : f32 to vector<16x128xf32>
    %240 = arith.subf %239, %238 : vector<16x128xf32>
    %241 = math.exp %240 : vector<16x128xf32>
    %cst_22 = arith.constant 1.000000e+00 : f32
    %242 = vector.broadcast %cst_22 : f32 to vector<16x128xf32>
    %243 = arith.addf %242, %241 : vector<16x128xf32>
    %244 = tpu.reciprocal %243 {approx = true} : vector<16x128xf32> -> vector<16x128xf32>
    %245 = vector.broadcast %32 : f32 to vector<16x128xf32>
    %246 = arith.mulf %99, %245 : vector<16x128xf32>
    %247 = vector.broadcast %33 : f32 to vector<16x128xf32>
    %248 = arith.mulf %102, %247 : vector<16x128xf32>
    %249 = arith.addf %246, %248 : vector<16x128xf32>
    %250 = vector.broadcast %34 : f32 to vector<16x128xf32>
    %251 = arith.mulf %105, %250 : vector<16x128xf32>
    %252 = arith.addf %249, %251 : vector<16x128xf32>
    %253 = vector.broadcast %35 : f32 to vector<16x128xf32>
    %254 = arith.mulf %108, %253 : vector<16x128xf32>
    %255 = arith.addf %252, %254 : vector<16x128xf32>
    %256 = vector.broadcast %36 : f32 to vector<16x128xf32>
    %257 = arith.mulf %111, %256 : vector<16x128xf32>
    %258 = arith.addf %255, %257 : vector<16x128xf32>
    %259 = vector.broadcast %37 : f32 to vector<16x128xf32>
    %260 = arith.mulf %114, %259 : vector<16x128xf32>
    %261 = arith.addf %258, %260 : vector<16x128xf32>
    %262 = vector.broadcast %38 : f32 to vector<16x128xf32>
    %263 = arith.mulf %117, %262 : vector<16x128xf32>
    %264 = arith.addf %261, %263 : vector<16x128xf32>
    %265 = vector.broadcast %39 : f32 to vector<16x128xf32>
    %266 = arith.mulf %120, %265 : vector<16x128xf32>
    %267 = arith.addf %264, %266 : vector<16x128xf32>
    %268 = vector.broadcast %52 : f32 to vector<16x128xf32>
    %269 = arith.addf %267, %268 : vector<16x128xf32>
    %cst_23 = arith.constant 0.000000e+00 : f32
    %270 = vector.broadcast %cst_23 : f32 to vector<16x128xf32>
    %271 = arith.subf %270, %269 : vector<16x128xf32>
    %272 = math.exp %271 : vector<16x128xf32>
    %cst_24 = arith.constant 1.000000e+00 : f32
    %273 = vector.broadcast %cst_24 : f32 to vector<16x128xf32>
    %274 = arith.addf %273, %272 : vector<16x128xf32>
    %275 = tpu.reciprocal %274 {approx = true} : vector<16x128xf32> -> vector<16x128xf32>
    %276 = vector.broadcast %40 : f32 to vector<16x128xf32>
    %277 = arith.mulf %99, %276 : vector<16x128xf32>
    %278 = vector.broadcast %41 : f32 to vector<16x128xf32>
    %279 = arith.mulf %102, %278 : vector<16x128xf32>
    %280 = arith.addf %277, %279 : vector<16x128xf32>
    %281 = vector.broadcast %42 : f32 to vector<16x128xf32>
    %282 = arith.mulf %105, %281 : vector<16x128xf32>
    %283 = arith.addf %280, %282 : vector<16x128xf32>
    %284 = vector.broadcast %43 : f32 to vector<16x128xf32>
    %285 = arith.mulf %108, %284 : vector<16x128xf32>
    %286 = arith.addf %283, %285 : vector<16x128xf32>
    %287 = vector.broadcast %44 : f32 to vector<16x128xf32>
    %288 = arith.mulf %111, %287 : vector<16x128xf32>
    %289 = arith.addf %286, %288 : vector<16x128xf32>
    %290 = vector.broadcast %45 : f32 to vector<16x128xf32>
    %291 = arith.mulf %114, %290 : vector<16x128xf32>
    %292 = arith.addf %289, %291 : vector<16x128xf32>
    %293 = vector.broadcast %46 : f32 to vector<16x128xf32>
    %294 = arith.mulf %117, %293 : vector<16x128xf32>
    %295 = arith.addf %292, %294 : vector<16x128xf32>
    %296 = vector.broadcast %47 : f32 to vector<16x128xf32>
    %297 = arith.mulf %120, %296 : vector<16x128xf32>
    %298 = arith.addf %295, %297 : vector<16x128xf32>
    %299 = vector.broadcast %53 : f32 to vector<16x128xf32>
    %300 = arith.addf %298, %299 : vector<16x128xf32>
    %cst_25 = arith.constant 0.000000e+00 : f32
    %301 = vector.broadcast %cst_25 : f32 to vector<16x128xf32>
    %302 = arith.subf %301, %300 : vector<16x128xf32>
    %303 = math.exp %302 : vector<16x128xf32>
    %cst_26 = arith.constant 1.000000e+00 : f32
    %304 = vector.broadcast %cst_26 : f32 to vector<16x128xf32>
    %305 = arith.addf %304, %303 : vector<16x128xf32>
    %306 = tpu.reciprocal %305 {approx = true} : vector<16x128xf32> -> vector<16x128xf32>
    %307 = vector.broadcast %54 : f32 to vector<16x128xf32>
    %308 = arith.mulf %151, %307 : vector<16x128xf32>
    %309 = vector.broadcast %55 : f32 to vector<16x128xf32>
    %310 = arith.mulf %182, %309 : vector<16x128xf32>
    %311 = arith.addf %308, %310 : vector<16x128xf32>
    %312 = vector.broadcast %56 : f32 to vector<16x128xf32>
    %313 = arith.mulf %213, %312 : vector<16x128xf32>
    %314 = arith.addf %311, %313 : vector<16x128xf32>
    %315 = vector.broadcast %57 : f32 to vector<16x128xf32>
    %316 = arith.mulf %244, %315 : vector<16x128xf32>
    %317 = arith.addf %314, %316 : vector<16x128xf32>
    %318 = vector.broadcast %58 : f32 to vector<16x128xf32>
    %319 = arith.mulf %275, %318 : vector<16x128xf32>
    %320 = arith.addf %317, %319 : vector<16x128xf32>
    %321 = vector.broadcast %59 : f32 to vector<16x128xf32>
    %322 = arith.mulf %306, %321 : vector<16x128xf32>
    %323 = arith.addf %320, %322 : vector<16x128xf32>
    %324 = vector.broadcast %78 : f32 to vector<16x128xf32>
    %325 = arith.addf %323, %324 : vector<16x128xf32>
    %cst_27 = arith.constant 0.000000e+00 : f32
    %326 = vector.broadcast %cst_27 : f32 to vector<16x128xf32>
    %327 = arith.subf %326, %325 : vector<16x128xf32>
    %328 = math.exp %327 : vector<16x128xf32>
    %cst_28 = arith.constant 1.000000e+00 : f32
    %329 = vector.broadcast %cst_28 : f32 to vector<16x128xf32>
    %330 = arith.addf %329, %328 : vector<16x128xf32>
    %331 = tpu.reciprocal %330 {approx = true} : vector<16x128xf32> -> vector<16x128xf32>
    %332 = vector.broadcast %60 : f32 to vector<16x128xf32>
    %333 = arith.mulf %151, %332 : vector<16x128xf32>
    %334 = vector.broadcast %61 : f32 to vector<16x128xf32>
    %335 = arith.mulf %182, %334 : vector<16x128xf32>
    %336 = arith.addf %333, %335 : vector<16x128xf32>
    %337 = vector.broadcast %62 : f32 to vector<16x128xf32>
    %338 = arith.mulf %213, %337 : vector<16x128xf32>
    %339 = arith.addf %336, %338 : vector<16x128xf32>
    %340 = vector.broadcast %63 : f32 to vector<16x128xf32>
    %341 = arith.mulf %244, %340 : vector<16x128xf32>
    %342 = arith.addf %339, %341 : vector<16x128xf32>
    %343 = vector.broadcast %64 : f32 to vector<16x128xf32>
    %344 = arith.mulf %275, %343 : vector<16x128xf32>
    %345 = arith.addf %342, %344 : vector<16x128xf32>
    %346 = vector.broadcast %65 : f32 to vector<16x128xf32>
    %347 = arith.mulf %306, %346 : vector<16x128xf32>
    %348 = arith.addf %345, %347 : vector<16x128xf32>
    %349 = vector.broadcast %79 : f32 to vector<16x128xf32>
    %350 = arith.addf %348, %349 : vector<16x128xf32>
    %cst_29 = arith.constant 0.000000e+00 : f32
    %351 = vector.broadcast %cst_29 : f32 to vector<16x128xf32>
    %352 = arith.subf %351, %350 : vector<16x128xf32>
    %353 = math.exp %352 : vector<16x128xf32>
    %cst_30 = arith.constant 1.000000e+00 : f32
    %354 = vector.broadcast %cst_30 : f32 to vector<16x128xf32>
    %355 = arith.addf %354, %353 : vector<16x128xf32>
    %356 = tpu.reciprocal %355 {approx = true} : vector<16x128xf32> -> vector<16x128xf32>
    %357 = vector.broadcast %66 : f32 to vector<16x128xf32>
    %358 = arith.mulf %151, %357 : vector<16x128xf32>
    %359 = vector.broadcast %67 : f32 to vector<16x128xf32>
    %360 = arith.mulf %182, %359 : vector<16x128xf32>
    %361 = arith.addf %358, %360 : vector<16x128xf32>
    %362 = vector.broadcast %68 : f32 to vector<16x128xf32>
    %363 = arith.mulf %213, %362 : vector<16x128xf32>
    %364 = arith.addf %361, %363 : vector<16x128xf32>
    %365 = vector.broadcast %69 : f32 to vector<16x128xf32>
    %366 = arith.mulf %244, %365 : vector<16x128xf32>
    %367 = arith.addf %364, %366 : vector<16x128xf32>
    %368 = vector.broadcast %70 : f32 to vector<16x128xf32>
    %369 = arith.mulf %275, %368 : vector<16x128xf32>
    %370 = arith.addf %367, %369 : vector<16x128xf32>
    %371 = vector.broadcast %71 : f32 to vector<16x128xf32>
    %372 = arith.mulf %306, %371 : vector<16x128xf32>
    %373 = arith.addf %370, %372 : vector<16x128xf32>
    %374 = vector.broadcast %80 : f32 to vector<16x128xf32>
    %375 = arith.addf %373, %374 : vector<16x128xf32>
    %cst_31 = arith.constant 0.000000e+00 : f32
    %376 = vector.broadcast %cst_31 : f32 to vector<16x128xf32>
    %377 = arith.subf %376, %375 : vector<16x128xf32>
    %378 = math.exp %377 : vector<16x128xf32>
    %cst_32 = arith.constant 1.000000e+00 : f32
    %379 = vector.broadcast %cst_32 : f32 to vector<16x128xf32>
    %380 = arith.addf %379, %378 : vector<16x128xf32>
    %381 = tpu.reciprocal %380 {approx = true} : vector<16x128xf32> -> vector<16x128xf32>
    %382 = vector.broadcast %72 : f32 to vector<16x128xf32>
    %383 = arith.mulf %151, %382 : vector<16x128xf32>
    %384 = vector.broadcast %73 : f32 to vector<16x128xf32>
    %385 = arith.mulf %182, %384 : vector<16x128xf32>
    %386 = arith.addf %383, %385 : vector<16x128xf32>
    %387 = vector.broadcast %74 : f32 to vector<16x128xf32>
    %388 = arith.mulf %213, %387 : vector<16x128xf32>
    %389 = arith.addf %386, %388 : vector<16x128xf32>
    %390 = vector.broadcast %75 : f32 to vector<16x128xf32>
    %391 = arith.mulf %244, %390 : vector<16x128xf32>
    %392 = arith.addf %389, %391 : vector<16x128xf32>
    %393 = vector.broadcast %76 : f32 to vector<16x128xf32>
    %394 = arith.mulf %275, %393 : vector<16x128xf32>
    %395 = arith.addf %392, %394 : vector<16x128xf32>
    %396 = vector.broadcast %77 : f32 to vector<16x128xf32>
    %397 = arith.mulf %306, %396 : vector<16x128xf32>
    %398 = arith.addf %395, %397 : vector<16x128xf32>
    %399 = vector.broadcast %81 : f32 to vector<16x128xf32>
    %400 = arith.addf %398, %399 : vector<16x128xf32>
    %cst_33 = arith.constant 0.000000e+00 : f32
    %401 = vector.broadcast %cst_33 : f32 to vector<16x128xf32>
    %402 = arith.subf %401, %400 : vector<16x128xf32>
    %403 = math.exp %402 : vector<16x128xf32>
    %cst_34 = arith.constant 1.000000e+00 : f32
    %404 = vector.broadcast %cst_34 : f32 to vector<16x128xf32>
    %405 = arith.addf %404, %403 : vector<16x128xf32>
    %406 = tpu.reciprocal %405 {approx = true} : vector<16x128xf32> -> vector<16x128xf32>
    %407 = vector.broadcast %82 : f32 to vector<16x128xf32>
    %408 = arith.mulf %331, %407 : vector<16x128xf32>
    %409 = vector.broadcast %83 : f32 to vector<16x128xf32>
    %410 = arith.mulf %356, %409 : vector<16x128xf32>
    %411 = arith.addf %408, %410 : vector<16x128xf32>
    %412 = vector.broadcast %84 : f32 to vector<16x128xf32>
    %413 = arith.mulf %381, %412 : vector<16x128xf32>
    %414 = arith.addf %411, %413 : vector<16x128xf32>
    %415 = vector.broadcast %85 : f32 to vector<16x128xf32>
    %416 = arith.mulf %406, %415 : vector<16x128xf32>
    %417 = arith.addf %414, %416 : vector<16x128xf32>
    %418 = vector.broadcast %90 : f32 to vector<16x128xf32>
    %419 = arith.addf %417, %418 : vector<16x128xf32>
    %cst_35 = arith.constant 0.000000e+00 : f32
    %420 = vector.broadcast %cst_35 : f32 to vector<16x128xf32>
    %421 = arith.subf %420, %419 : vector<16x128xf32>
    %422 = math.exp %421 : vector<16x128xf32>
    %cst_36 = arith.constant 1.000000e+00 : f32
    %423 = vector.broadcast %cst_36 : f32 to vector<16x128xf32>
    %424 = arith.addf %423, %422 : vector<16x128xf32>
    %425 = tpu.reciprocal %424 {approx = true} : vector<16x128xf32> -> vector<16x128xf32>
    %426 = vector.broadcast %86 : f32 to vector<16x128xf32>
    %427 = arith.mulf %331, %426 : vector<16x128xf32>
    %428 = vector.broadcast %87 : f32 to vector<16x128xf32>
    %429 = arith.mulf %356, %428 : vector<16x128xf32>
    %430 = arith.addf %427, %429 : vector<16x128xf32>
    %431 = vector.broadcast %88 : f32 to vector<16x128xf32>
    %432 = arith.mulf %381, %431 : vector<16x128xf32>
    %433 = arith.addf %430, %432 : vector<16x128xf32>
    %434 = vector.broadcast %89 : f32 to vector<16x128xf32>
    %435 = arith.mulf %406, %434 : vector<16x128xf32>
    %436 = arith.addf %433, %435 : vector<16x128xf32>
    %437 = vector.broadcast %91 : f32 to vector<16x128xf32>
    %438 = arith.addf %436, %437 : vector<16x128xf32>
    %cst_37 = arith.constant 0.000000e+00 : f32
    %439 = vector.broadcast %cst_37 : f32 to vector<16x128xf32>
    %440 = arith.subf %439, %438 : vector<16x128xf32>
    %441 = math.exp %440 : vector<16x128xf32>
    %cst_38 = arith.constant 1.000000e+00 : f32
    %442 = vector.broadcast %cst_38 : f32 to vector<16x128xf32>
    %443 = arith.addf %442, %441 : vector<16x128xf32>
    %444 = tpu.reciprocal %443 {approx = true} : vector<16x128xf32> -> vector<16x128xf32>
    %445 = vector.broadcast %92 : f32 to vector<16x128xf32>
    %446 = arith.mulf %425, %445 : vector<16x128xf32>
    %447 = vector.broadcast %93 : f32 to vector<16x128xf32>
    %448 = arith.mulf %444, %447 : vector<16x128xf32>
    %449 = arith.addf %446, %448 : vector<16x128xf32>
    %450 = vector.broadcast %94 : f32 to vector<16x128xf32>
    %451 = arith.addf %449, %450 : vector<16x128xf32>
    %cst_39 = arith.constant 0.000000e+00 : f32
    %452 = vector.broadcast %cst_39 : f32 to vector<16x128xf32>
    %453 = arith.subf %452, %451 : vector<16x128xf32>
    %454 = math.exp %453 : vector<16x128xf32>
    %cst_40 = arith.constant 1.000000e+00 : f32
    %455 = vector.broadcast %cst_40 : f32 to vector<16x128xf32>
    %456 = arith.addf %455, %454 : vector<16x128xf32>
    %457 = tpu.reciprocal %456 {approx = true} : vector<16x128xf32> -> vector<16x128xf32>
    %458 = arith.index_cast %96 : i32 to index
    %c0_41 = arith.constant 0 : index
    %459 = vector.load %arg3[%458, %c0_41] : memref<16x128xf32, #tpu.memory_space<vmem>>, vector<16x128xf32>
    tpu.vector_store %arg3[%458, %c0_41], %457 {strides = array<i32>} : memref<16x128xf32, #tpu.memory_space<vmem>>, vector<16x128xf32>,
    %c1_i32 = arith.constant 1 : i32
    return
  }
  func.func @transform_0(%arg0: i32) -> i32 {
    %c0_i32 = arith.constant 0 : i32
    %c0_i32_0 = arith.constant 0 : i32
    return %c0_i32 : i32
  }
  func.func @transform_1(%arg0: i32) -> (i32, i32, i32) {
    %c0_i32 = arith.constant 0 : i32
    %c0_i32_0 = arith.constant 0 : i32
    %c0_i32_1 = arith.constant 0 : i32
    return %c0_i32, %arg0, %c0_i32_0 : i32, i32, i32
  }
  func.func @transform_2(%arg0: i32) -> (i32, i32) {
    %c0_i32 = arith.constant 0 : i32
    %c0_i32_0 = arith.constant 0 : i32
    return %arg0, %c0_i32 : i32, i32
  }
}

</mosaic_0001>

<bundles_post_ra>
// kernel: mlp_forward.1
= control target key start
LH: loop header
LB: loop body
LE: loop exit
PB: predicated region body
PF: predicated region fallthrough
CT: control target
= control target key end

     0   :  { %7 = vsyncpa [#allocation3], 0  ;;  %s1447_s0 = inlined_call_operand.vmem [shape: f32[95], index: 0, kind: input, shape index: {}]   ;;  %s1448_s1 = inlined_call_operand.vmem [shape: f32[8,16,128], index: 1, kind: input, shape index: {}]   ;;  %s1449_s2 = inlined_call_operand.vmem [shape: f32[16,128], index: 2, kind: output, shape index: {}]  }
   0x1   :  { %s14_s11 = sshll.u32 %s1447_s0, 4  ;;  %s15_s11 = int_to_ptr.vmem [resolvable:$true] %s14_s11 }
   0x2   :  { %s929_s12 = scalar_lea.vmem %s15_s11, 16  ;;  %p934_p1 = scmp.lt.s32.totalorder %s15_s11, %s15_s11 }
   0x3   :  { %p930_p0 = scmp.ne.s32.totalorder %s15_s11, %s929_s12  ;;  %p935_p2 = scmp.lt.s32.totalorder %s929_s12, %s929_s12 }
   0x5   :  { %p936_p3 = por %p935_p2, %p934_p1 }
   0x7   :  { %p937_p4 = pnand %p936_p3, %p930_p0 }
   0x9   :  { %940 = shalt.err (!%p937_p4)
}
   0xa   :  { %s943_s13 = smov [#allocation2]  }
   0xb   :  { %17 = dma.vmem_to_smem %s15_s11, 16, %s943_s13, [#allocation3]  }
   0xc   :  { %941 = dma.done.wait [#allocation3], 16  }
   0xd   :  { %942 = vsyncadd [#allocation3], 4294967280 }
   0xe   :  { %23 = sfence }
   0xf   :  { %s24_s14 = sld [smem:[#allocation2]]  ;;  %v969_v0 = vld [vmem:[%s1448_s1] sm:$0xff]  ;;  %v974_v1 = vld [vmem:[%s1448_s1 + $0x8] sm:$0xff]  ;;  %v981_v2 = vld [vmem:[%s1448_s1 + $0x10] sm:$0xff] }
  0x10   :  { %s716_s15 = sld [smem:[#allocation2 + $0x1]]  ;;  %v986_v3 = vld [vmem:[%s1448_s1 + $0x18] sm:$0xff]  ;;  %v993_v4 = vld [vmem:[%s1448_s1 + $0x20] sm:$0xff]  ;;  %v998_v5 = vld [vmem:[%s1448_s1 + $0x28] sm:$0xff] }
  0x11   :  { %s717_s16 = sld [smem:[#allocation2 + $0x2]]  ;;  %v1005_v7 = vld [vmem:[%s1448_s1 + $0x30] sm:$0xff]  ;;  %v1010_v8 = vld [vmem:[%s1448_s1 + $0x38] sm:$0xff]  ;;  %v1023_v15 = vld [vmem:[%s1448_s1 + $0x40] sm:$0xff] }
  0x12   :  { %s962_s17 = sld [smem:[#allocation2 + $0x3]]  ;;  %v1028_v16 = vld [vmem:[%s1448_s1 + $0x48] sm:$0xff]  ;;  %v1038_v20 = vld [vmem:[%s1448_s1 + $0x50] sm:$0xff]  ;;  %v1043_v21 = vld [vmem:[%s1448_s1 + $0x58] sm:$0xff] }
  0x13   :  { %s964_s18 = sld [smem:[#allocation2 + $0x4]]  ;;  %v1052_v26 = vld [vmem:[%s1448_s1 + $0x60] sm:$0xff]  ;;  %v1057_v27 = vld [vmem:[%s1448_s1 + $0x68] sm:$0xff]  ;;  %v1066_v30 = vld [vmem:[%s1448_s1 + $0x70] sm:$0xff] }
  0x14   :  { %s976_s22 = sld [smem:[#allocation2 + $0x5]]  ;;  %v1071_v31 = vld [vmem:[%s1448_s1 + $0x78] sm:$0xff] }
  0x15   :  { %s988_s27 = sld [smem:[#allocation2 + $0x6]]  ;;  %v149_v6 = vstv %s24_s14 }
  0x16   :  { %s1000_s4 = sld [smem:[#allocation2 + $0x7]]  ;;  %v150_v9 = vmul.f32 %v149_v6, %v969_v0  ;;  %v151_v10 = vmul.f32 %v149_v6, %v974_v1  ;;  %v152_v11 = vstv %s716_s15 }
  0x17   :  { %s1014_s9 = sld [smem:[#allocation2 + $0x8]]  ;;  %v153_v12 = vmul.f32 %v981_v2, %v152_v11  ;;  %v154_v13 = vmul.f32 %v986_v3, %v152_v11  ;;  %v157_v14 = vstv %s717_s16 }
  0x18   :  { %s1018_s10 = sld [smem:[#allocation2 + $0x9]]  ;;  %v158_v17 = vmul.f32 %v993_v4, %v157_v14  ;;  %v159_v18 = vmul.f32 %v998_v5, %v157_v14  ;;  %v162_v19 = vstv %s962_s17 }
  0x19   :  { %s1033_s15 = sld [smem:[#allocation2 + $0xa]]  ;;  %v155_v22 = vadd.f32 %v153_v12, %v150_v9  ;;  %v156_v23 = vadd.f32 %v154_v13, %v151_v10  ;;  %v163_v24 = vmul.f32 %v1005_v7, %v162_v19  ;;  %v164_v25 = vmul.f32 %v1010_v8, %v162_v19 }
  0x1a   :  { %s1047_s17 = sld [smem:[#allocation2 + $0xb]]  ;;  %v167_v28 = vstv %s964_s18  ;;  %v172_v29 = vstv %s976_s22 }
  0x1b   :  { %s1061_s26 = sld [smem:[#allocation2 + $0xc]]  ;;  %v160_v32 = vadd.f32 %v158_v17, %v155_v22  ;;  %v161_v33 = vadd.f32 %v159_v18, %v156_v23  ;;  %v168_v34 = vmul.f32 %v1023_v15, %v167_v28  ;;  %v169_v35 = vmul.f32 %v1028_v16, %v167_v28 }
  0x1c   :  { %s1075_s18 = sld [smem:[#allocation2 + $0xd]]  ;;  %v173_v36 = vmul.f32 %v1038_v20, %v172_v29  ;;  %v174_v37 = vmul.f32 %v1043_v21, %v172_v29  ;;  %v177_v38 = vstv %s988_s27  ;;  %v182_v39 = vstv %s1000_s4 }
  0x1d   :  { %s1081_s22 = sld [smem:[#allocation2 + $0xe]]  ;;  %v165_v40 = vadd.f32 %v163_v24, %v160_v32  ;;  %v166_v41 = vadd.f32 %v164_v25, %v161_v33  ;;  %v178_v42 = vmul.f32 %v1052_v26, %v177_v38  ;;  %v179_v43 = vmul.f32 %v1057_v27, %v177_v38 }
  0x1e   :  { %s1085_s1 = sld [smem:[#allocation2 + $0xf]]  ;;  %v183_v44 = vmul.f32 %v1066_v30, %v182_v39  ;;  %v184_v45 = vmul.f32 %v1071_v31, %v182_v39  ;;  %v200_v46 = vstv %s1014_s9  ;;  %v203_v47 = vstv %s1018_s10 }
  0x1f   :  { %s1091_s27 = sld [smem:[#allocation2 + $0x10]]  ;;  %v170_v48 = vadd.f32 %v168_v34, %v165_v40  ;;  %v171_v49 = vadd.f32 %v169_v35, %v166_v41  ;;  %v201_v50 = vmul.f32 %v200_v46, %v969_v0  ;;  %v202_v51 = vmul.f32 %v200_v46, %v974_v1 }
  0x20   :  { %s1095_s4 = sld [smem:[#allocation2 + $0x11]]  ;;  %v204_v52 = vmul.f32 %v981_v2, %v203_v47  ;;  %v205_v53 = vmul.f32 %v986_v3, %v203_v47  ;;  %v208_v54 = vstv %s1033_s15  ;;  %v213_v55 = vstv %s1047_s17 }
  0x21   :  { %s1101_s5 = sld [smem:[#allocation2 + $0x12]]  ;;  %v175_v56 = vadd.f32 %v173_v36, %v170_v48  ;;  %v176_v57 = vadd.f32 %v174_v37, %v171_v49  ;;  %v209_v58 = vmul.f32 %v993_v4, %v208_v54  ;;  %v210_v59 = vmul.f32 %v998_v5, %v208_v54 }
  0x22   :  { %s1105_s6 = sld [smem:[#allocation2 + $0x13]]  ;;  %v206_v60 = vadd.f32 %v204_v52, %v201_v50  ;;  %v207_v61 = vadd.f32 %v205_v53, %v202_v51  ;;  %v214_v62 = vmul.f32 %v1005_v7, %v213_v55  ;;  %v215_v63 = vmul.f32 %v1010_v8, %v213_v55 }
  0x23   :  { %s1109_s7 = sld [smem:[#allocation2 + $0x14]]  ;;  %v180_v6 = vadd.f32 %v178_v42, %v175_v56  ;;  %v181_v9 = vadd.f32 %v179_v43, %v176_v57  ;;  %v218_v10 = vstv %s1061_s26  ;;  %v223_v11 = vstv %s1075_s18 }
  0x24   :  { %s1113_s8 = sld [smem:[#allocation2 + $0x15]]  ;;  %v211_v12 = vadd.f32 %v209_v58, %v206_v60  ;;  %v212_v13 = vadd.f32 %v210_v59, %v207_v61  ;;  %v219_v14 = vmul.f32 %v1023_v15, %v218_v10  ;;  %v220_v17 = vmul.f32 %v1028_v16, %v218_v10 }
  0x25   :  { %s1117_s9 = sld [smem:[#allocation2 + $0x16]]  ;;  %v1119_v18 = vadd.f32 %v183_v44, %v180_v6  ;;  %v1121_v19 = vadd.f32 %v184_v45, %v181_v9  ;;  %v224_v22 = vmul.f32 %v1038_v20, %v223_v11  ;;  %v225_v23 = vmul.f32 %v1043_v21, %v223_v11 }
  0x26   :  { %s1125_s10 = sld [smem:[#allocation2 + $0x17]]  ;;  %v216_v24 = vadd.f32 %v214_v62, %v211_v12  ;;  %v217_v25 = vadd.f32 %v215_v63, %v212_v13  ;;  %v228_v28 = vstv %s1081_s22  ;;  %v233_v29 = vstv %s1085_s1 }
  0x27   :  { %s1129_s11 = sld [smem:[#allocation2 + $0x18]]  ;;  %v229_v32 = vmul.f32 %v1052_v26, %v228_v28  ;;  %v230_v33 = vmul.f32 %v1057_v27, %v228_v28  ;;  %v234_v34 = vmul.f32 %v1066_v30, %v233_v29  ;;  %v235_v35 = vmul.f32 %v1071_v31, %v233_v29 }
  0x28   :  { %s1135_s12 = sld [smem:[#allocation2 + $0x19]]  ;;  %v221_v36 = vadd.f32 %v219_v14, %v216_v24  ;;  %v222_v37 = vadd.f32 %v220_v17, %v217_v25  ;;  %v251_v38 = vstv %s1091_s27  ;;  %v254_v39 = vstv %s1095_s4 }
  0x29   :  { %s1139_s13 = sld [smem:[#allocation2 + $0x1a]]  ;;  %v252_v40 = vmul.f32 %v251_v38, %v969_v0  ;;  %v253_v41 = vmul.f32 %v251_v38, %v974_v1  ;;  %v255_v42 = vmul.f32 %v981_v2, %v254_v39  ;;  %v256_v43 = vmul.f32 %v986_v3, %v254_v39 }
  0x2a   :  { %s1145_s14 = sld [smem:[#allocation2 + $0x1b]]  ;;  %v226_v44 = vadd.f32 %v224_v22, %v221_v36  ;;  %v227_v45 = vadd.f32 %v225_v23, %v222_v37  ;;  %v259_v46 = vstv %s1101_s5  ;;  %v264_v47 = vstv %s1105_s6 }
  0x2b   :  { %s1149_s15 = sld [smem:[#allocation2 + $0x1c]]  ;;  %v257_v48 = vadd.f32 %v255_v42, %v252_v40  ;;  %v258_v49 = vadd.f32 %v256_v43, %v253_v41  ;;  %v260_v50 = vmul.f32 %v993_v4, %v259_v46  ;;  %v261_v51 = vmul.f32 %v998_v5, %v259_v46 }
  0x2c   :  { %s1153_s16 = sld [smem:[#allocation2 + $0x1d]]  ;;  %v231_v52 = vadd.f32 %v229_v32, %v226_v44  ;;  %v232_v53 = vadd.f32 %v230_v33, %v227_v45  ;;  %v265_v54 = vmul.f32 %v1005_v7, %v264_v47  ;;  %v266_v55 = vmul.f32 %v1010_v8, %v264_v47 }
  0x2d   :  { %v262_v56 = vadd.f32 %v260_v50, %v257_v48  ;;  %v263_v57 = vadd.f32 %v261_v51, %v258_v49  ;;  %v269_v58 = vstv %s1109_s7  ;;  %v274_v59 = vstv %s1113_s8  ;;  %s1159_s0 = sld [smem:[#allocation2 + $0x1e]] }
  0x2e   :  { %v1161_v60 = vadd.f32 %v234_v34, %v231_v52  ;;  %v1163_v61 = vadd.f32 %v235_v35, %v232_v53  ;;  %v270_v62 = vmul.f32 %v1023_v15, %v269_v58  ;;  %v271_v63 = vmul.f32 %v1028_v16, %v269_v58  ;;  %s1167_s19 = sld [smem:[#allocation2 + $0x1f]] }
  0x2f   :  { %v267_v6 = vadd.f32 %v265_v54, %v262_v56  ;;  %v268_v9 = vadd.f32 %v266_v55, %v263_v57  ;;  %v275_v10 = vmul.f32 %v1038_v20, %v274_v59  ;;  %v276_v11 = vmul.f32 %v1043_v21, %v274_v59  ;;  %s1171_s20 = sld [smem:[#allocation2 + $0x20]] }
  0x30   :  { %v279_v12 = vstv %s1117_s9  ;;  %v284_v13 = vstv %s1125_s10  ;;  %v302_v14 = vstv %s1129_s11  ;;  %v305_v17 = vstv %s1135_s12  ;;  %s1177_s17 = sld [smem:[#allocation2 + $0x21]] }
  0x31   :  { %v272_v22 = vadd.f32 %v270_v62, %v267_v6  ;;  %v273_v23 = vadd.f32 %v271_v63, %v268_v9  ;;  %v280_v24 = vmul.f32 %v1052_v26, %v279_v12  ;;  %v281_v25 = vmul.f32 %v1057_v27, %v279_v12  ;;  %s1181_s21 = sld [smem:[#allocation2 + $0x22]] }
  0x32   :  { %v285_v28 = vmul.f32 %v1066_v30, %v284_v13  ;;  %v286_v29 = vmul.f32 %v1071_v31, %v284_v13  ;;  %v303_v32 = vmul.f32 %v302_v14, %v969_v0  ;;  %v304_v33 = vmul.f32 %v302_v14, %v974_v1  ;;  %s1187_s23 = sld [smem:[#allocation2 + $0x23]] }
  0x33   :  { %v277_v34 = vadd.f32 %v275_v10, %v272_v22  ;;  %v278_v35 = vadd.f32 %v276_v11, %v273_v23  ;;  %v306_v36 = vmul.f32 %v981_v2, %v305_v17  ;;  %v307_v37 = vmul.f32 %v986_v3, %v305_v17  ;;  %s1191_s24 = sld [smem:[#allocation2 + $0x24]] }
  0x34   :  { %v310_v38 = vstv %s1139_s13  ;;  %v315_v39 = vstv %s1145_s14  ;;  %v320_v40 = vstv %s1149_s15  ;;  %v325_v41 = vstv %s1153_s16  ;;  %s1197_s25 = sld [smem:[#allocation2 + $0x25]] }
  0x35   :  { %v282_v42 = vadd.f32 %v280_v24, %v277_v34  ;;  %v283_v43 = vadd.f32 %v281_v25, %v278_v35  ;;  %v308_v44 = vadd.f32 %v306_v36, %v303_v32  ;;  %v309_v45 = vadd.f32 %v307_v37, %v304_v33  ;;  %s1211_s26 = sld [smem:[#allocation2 + $0x26]] }
  0x36   :  { %v311_v46 = vmul.f32 %v993_v4, %v310_v38  ;;  %v312_v47 = vmul.f32 %v998_v5, %v310_v38  ;;  %v316_v48 = vmul.f32 %v1005_v7, %v315_v39  ;;  %v317_v49 = vmul.f32 %v1010_v8, %v315_v39  ;;  %s1217_s28 = sld [smem:[#allocation2 + $0x27]] }
  0x37   :  { %v1203_v50 = vadd.f32 %v285_v28, %v282_v42  ;;  %v1205_v51 = vadd.f32 %v286_v29, %v283_v43  ;;  %v321_v52 = vmul.f32 %v1023_v15, %v320_v40  ;;  %v322_v53 = vmul.f32 %v1028_v16, %v320_v40  ;;  %s1221_s29 = sld [smem:[#allocation2 + $0x28]] }
  0x38   :  { %v313_v54 = vadd.f32 %v311_v46, %v308_v44  ;;  %v314_v55 = vadd.f32 %v312_v47, %v309_v45  ;;  %v326_v56 = vmul.f32 %v1038_v20, %v325_v41  ;;  %v327_v57 = vmul.f32 %v1043_v21, %v325_v41  ;;  %s1227_s30 = sld [smem:[#allocation2 + $0x29]] }
  0x39   :  { %v330_v58 = vstv %s1159_s0  ;;  %v335_v59 = vstv %s1167_s19  ;;  %v353_v62 = vstv %s1171_s20  ;;  %v356_v63 = vstv %s1177_s17  ;;  %s1235_s3 = sld [smem:[#allocation2 + $0x30]] }
  0x3a   :  { %v318_v6 = vadd.f32 %v316_v48, %v313_v54  ;;  %v319_v9 = vadd.f32 %v317_v49, %v314_v55  ;;  %v331_v10 = vmul.f32 %v1052_v26, %v330_v58  ;;  %v332_v11 = vmul.f32 %v1057_v27, %v330_v58  ;;  %s1241_s18 = sld [smem:[#allocation2 + $0x31]] }
  0x3b   :  { %v336_v12 = vmul.f32 %v1066_v30, %v335_v59  ;;  %v337_v13 = vmul.f32 %v1071_v31, %v335_v59  ;;  %v354_v14 = vmul.f32 %v353_v62, %v969_v0  ;;  %v355_v17 = vmul.f32 %v353_v62, %v974_v1  ;;  %s1245_s22 = sld [smem:[#allocation2 + $0x32]] }
  0x3c   :  { %v323_v22 = vadd.f32 %v321_v52, %v318_v6  ;;  %v324_v23 = vadd.f32 %v322_v53, %v319_v9  ;;  %v357_v24 = vmul.f32 %v981_v2, %v356_v63  ;;  %v358_v25 = vmul.f32 %v986_v3, %v356_v63  ;;  %s1249_s1 = sld [smem:[#allocation2 + $0x33]] }
  0x3d   :  { %v361_v28 = vstv %s1181_s21  ;;  %v366_v29 = vstv %s1187_s23  ;;  %v371_v32 = vstv %s1191_s24  ;;  %v376_v33 = vstv %s1197_s25  ;;  %s1261_s27 = sld [smem:[#allocation2 + $0x34]] }
  0x3e   :  { %v328_v34 = vadd.f32 %v326_v56, %v323_v22  ;;  %v329_v35 = vadd.f32 %v327_v57, %v324_v23  ;;  %v359_v36 = vadd.f32 %v357_v24, %v354_v14  ;;  %v360_v37 = vadd.f32 %v358_v25, %v355_v17  ;;  %s1270_s4 = sld [smem:[#allocation2 + $0x2a]] }
  0x3f   :  { %v362_v38 = vmul.f32 %v993_v4, %v361_v28  ;;  %v363_v39 = vmul.f32 %v998_v5, %v361_v28  ;;  %v367_v40 = vmul.f32 %v1005_v7, %v366_v29  ;;  %v368_v41 = vmul.f32 %v1010_v8, %v366_v29  ;;  %s1274_s5 = sld [smem:[#allocation2 + $0x2b]] }
  0x40   :  { %v333_v42 = vadd.f32 %v331_v10, %v328_v34  ;;  %v334_v43 = vadd.f32 %v332_v11, %v329_v35  ;;  %v372_v44 = vmul.f32 %v1023_v15, %v371_v32  ;;  %v373_v45 = vmul.f32 %v1028_v16, %v371_v32  ;;  %s1277_s6 = sld [smem:[#allocation2 + $0x2c]] }
  0x41   :  { %v364_v46 = vadd.f32 %v362_v38, %v359_v36  ;;  %v365_v47 = vadd.f32 %v363_v39, %v360_v37  ;;  %v377_v48 = vmul.f32 %v1038_v20, %v376_v33  ;;  %v378_v49 = vmul.f32 %v1043_v21, %v376_v33  ;;  %s1279_s7 = sld [smem:[#allocation2 + $0x2d]] }
  0x42   :  { %v338_v52 = vadd.f32 %v336_v12, %v333_v42  ;;  %v339_v53 = vadd.f32 %v337_v13, %v334_v43  ;;  %v381_v54 = vstv %s1211_s26  ;;  %v386_v55 = vstv %s1217_s28  ;;  %s1281_s8 = sld [smem:[#allocation2 + $0x2e]] }
  0x43   :  { %v369_v56 = vadd.f32 %v367_v40, %v364_v46  ;;  %v370_v57 = vadd.f32 %v368_v41, %v365_v47  ;;  %v382_v58 = vmul.f32 %v1052_v26, %v381_v54  ;;  %v383_v59 = vmul.f32 %v1057_v27, %v381_v54  ;;  %s1284_s9 = sld [smem:[#allocation2 + $0x2f]] }
  0x44   :  { %v387_v62 = vmul.f32 %v1066_v30, %v386_v55  ;;  %v388_v63 = vmul.f32 %v1071_v31, %v386_v55  ;;  %v404_v6 = vstv %s1221_s29  ;;  %v407_v9 = vstv %s1227_s30  ;;  %s1295_s10 = sld [smem:[#allocation2 + $0x35]] }
  0x45   :  { %v187_v10 = vstv %s1235_s3  ;;  %v374_v11 = vadd.f32 %v372_v44, %v369_v56  ;;  %v375_v12 = vadd.f32 %v373_v45, %v370_v57  ;;  %v405_v13 = vmul.f32 %v404_v6, %v969_v0  ;;  %s1298_s11 = sld [smem:[#allocation2 + $0x36]] }
  0x46   :  { %v188_v14 = vadd.f32 %v187_v10, %v1119_v18  ;;  %v189_v17 = vadd.f32 %v187_v10, %v1121_v19  ;;  %v238_v22 = vstv %s1241_s18  ;;  %v406_v23 = vmul.f32 %v404_v6, %v974_v1  ;;  %s1303_s12 = sld [smem:[#allocation2 + $0x37]] }
  0x47   :  { %v239_v24 = vadd.f32 %v238_v22, %v1161_v60  ;;  %v240_v25 = vadd.f32 %v238_v22, %v1163_v61  ;;  %v289_v28 = vstv %s1245_s22  ;;  %v379_v29 = vadd.f32 %v377_v48, %v374_v11  ;;  %s1307_s13 = sld [smem:[#allocation2 + $0x38]] }
  0x48   :  { %v190_v32 = vsub.f32 0.0, %v188_v14  ;;  %v191_v0 = vsub.f32 0.0, %v189_v17  ;;  %v290_v33 = vadd.f32 %v289_v28, %v1203_v50  ;;  %v291_v18 = vadd.f32 %v289_v28, %v1205_v51  ;;  %s1310_s14 = sld [smem:[#allocation2 + $0x39]] }
  0x49   :  { %v241_v19 = vsub.f32 0.0, %v239_v24  ;;  %v242_v34 = vsub.f32 0.0, %v240_v25  ;;  %v340_v35 = vstv %s1249_s1  ;;  %v380_v1 = vadd.f32 %v378_v49, %v375_v12  ;;  %s1314_s15 = sld [smem:[#allocation2 + $0x3a]] }
  0x4a   :  { %v192_v36 = vmul.f32 1.442695, %v190_v32  ;;  %v194_v60 = vmul.f32 1.442695, %v191_v0  ;;  %v341_v37 = vadd.f32 %v340_v35, %v338_v52  ;;  %v342_v61 = vadd.f32 %v340_v35, %v339_v53  ;;  %s1317_s16 = sld [smem:[#allocation2 + $0x3c]] }
  0x4b   :  { %v243_v38 = vmul.f32 1.442695, %v241_v19  ;;  %v245_v39 = vmul.f32 1.442695, %v242_v34  ;;  %v384_v40 = vadd.f32 %v382_v58, %v379_v29  ;;  %v385_v41 = vadd.f32 %v383_v59, %v380_v1  ;;  %s1320_s0 = sld [smem:[#allocation2 + $0x3d]] }
  0x4c   :  { %825 = vpow2.f32 %v192_v36  ;;  %v292_v50 = vsub.f32 0.0, %v290_v33  ;;  %v293_v51 = vsub.f32 0.0, %v291_v18  ;;  %v343_v42 = vsub.f32 0.0, %v341_v37  ;;  %s1322_s19 = sld [smem:[#allocation2 + $0x3e]] }
  0x4d   :  { %827 = vpow2.f32 %v194_v60  ;;  %v344_v43 = vsub.f32 0.0, %v342_v61  ;;  %v389_v44 = vadd.f32 %v387_v62, %v384_v40  ;;  %v390_v45 = vadd.f32 %v388_v63, %v385_v41  ;;  %s1324_s20 = sld [smem:[#allocation2 + $0x3f]] }
  0x4e   :  { %829 = vpow2.f32 %v243_v38  ;;  %v294_v46 = vmul.f32 1.442695, %v292_v50  ;;  %v296_v47 = vmul.f32 1.442695, %v293_v51  ;;  %v391_v48 = vstv %s1261_s27  ;;  %s1327_s17 = sld [smem:[#allocation2 + $0x40]] }
  0x4f   :  { %831 = vpow2.f32 %v245_v39  ;;  %v345_v49 = vmul.f32 1.442695, %v343_v42  ;;  %v347_v52 = vmul.f32 1.442695, %v344_v43  ;;  %v392_v53 = vadd.f32 %v391_v48, %v389_v44  ;;  %s1329_s21 = sld [smem:[#allocation2 + $0x42]] }
  0x50   :  { %833 = vpow2.f32 %v294_v46  ;;  %v393_v54 = vadd.f32 %v391_v48, %v390_v45  ;;  %v408_v55 = vmul.f32 %v981_v2, %v407_v9  ;;  %v409_v56 = vmul.f32 %v986_v3, %v407_v9  ;;  %s1331_s23 = sld [smem:[#allocation2 + $0x43]] }
  0x51   :  { %835 = vpow2.f32 %v296_v47  ;;  %v394_v57 = vsub.f32 0.0, %v392_v53  ;;  %v412_v58 = vstv %s1270_s4  ;;  %v417_v59 = vstv %s1274_s5  ;;  %s1333_s24 = sld [smem:[#allocation2 + $0x44]] }
  0x52   :  { %837 = vpow2.f32 %v345_v49  ;;  %v395_v62 = vsub.f32 0.0, %v393_v54  ;;  %v410_v63 = vadd.f32 %v408_v55, %v405_v13  ;;  %v411_v6 = vadd.f32 %v409_v56, %v406_v23  ;;  %s1335_s25 = sld [smem:[#allocation2 + $0x45]] }
  0x53   :  { %v413_v10 = vmul.f32 %v993_v4, %v412_v58  ;;  %v414_v11 = vmul.f32 %v998_v5, %v412_v58  ;;  %v396_v12 = vmul.f32 1.442695, %v394_v57  ;;  %v418_v14 = vmul.f32 %v1005_v7, %v417_v59  ;;  %s1337_s26 = sld [smem:[#allocation2 + $0x48]] }
  0x54   :  { %v419_v2 = vmul.f32 %v1010_v8, %v417_v59  ;;  %v422_v3 = vstv %s1277_s6  ;;  %839 = vpow2.f32 %v347_v52  ;;  %v398_v22 = vmul.f32 1.442695, %v395_v62  ;;  %s1339_s28 = sld [smem:[#allocation2 + $0x49]] }
  0x55   :  { %v415_v9 = vadd.f32 %v413_v10, %v410_v63  ;;  %v416_v17 = vadd.f32 %v414_v11, %v411_v6  ;;  %v423_v13 = vmul.f32 %v1023_v15, %v422_v3  ;;  %v424_v4 = vmul.f32 %v1028_v16, %v422_v3  ;;  %s1341_s29 = sld [smem:[#allocation2 + $0x4a]] }
  0x56   :  { %v427_v5 = vstv %s1279_s7  ;;  %v432_v23 = vstv %s1281_s8  ;;  %841 = vpow2.f32 %v396_v12  ;;  %v437_v28 = vstv %s1284_s9  ;;  %s1343_s30 = sld [smem:[#allocation2 + $0x4b]] }
  0x57   :  { %v420_v7 = vadd.f32 %v418_v14, %v415_v9  ;;  %v421_v8 = vadd.f32 %v419_v2, %v416_v17  ;;  %v428_v24 = vmul.f32 %v1038_v20, %v427_v5  ;;  %v429_v25 = vmul.f32 %v1043_v21, %v427_v5  ;;  %s1363_s3 = sld [smem:[#allocation2 + $0x46]] }
  0x58   :  { %v433_v16 = vmul.f32 %v1052_v26, %v432_v23  ;;  %v434_v0 = vmul.f32 %v1057_v27, %v432_v23  ;;  %843 = vpow2.f32 %v398_v22  ;;  %v438_v20 = vmul.f32 %v1066_v30, %v437_v28  ;;  %s1365_s18 = sld [smem:[#allocation2 + $0x4c]] }
  0x59   :  { %v826_v15 = vpop.eup %825  ;;  %v425_v29 = vadd.f32 %v423_v13, %v420_v7  ;;  %v426_v32 = vadd.f32 %v424_v4, %v421_v8  ;;  %v439_v1 = vmul.f32 %v1071_v31, %v437_v28  ;;  %v442_v39 = vstv %s1295_s10  ;;  %s1367_s22 = sld [smem:[#allocation2 + $0x3b]] }
  0x5a   :  { %v828_v33 = vpop.eup %827  ;;  %v196_v18 = vadd.f32 1.0, %v826_v15  ;;  %v455_v58 = vstv %s1298_s11  ;;  %v458_v59 = vstv %s1303_s12  ;;  %v463_v63 = vstv %s1307_s13  ;;  %s1369_s1 = sld [smem:[#allocation2 + $0x41]] }
  0x5b   :  { %v830_v21 = vpop.eup %829  ;;  %v197_v19 = vadd.f32 1.0, %v828_v33  ;;  %v430_v34 = vadd.f32 %v428_v24, %v425_v29  ;;  %v431_v35 = vadd.f32 %v429_v25, %v426_v32  ;;  %v468_v6 = vstv %s1310_s14  ;;  %s1371_s27 = sld [smem:[#allocation2 + $0x47]] }
  0x5c   :  { %v832_v36 = vpop.eup %831  ;;  %845 = vrcp.f32 %v196_v18  ;;  %v247_v26 = vadd.f32 1.0, %v830_v21  ;;  %v496_v10 = vstv %s1317_s16  ;;  %v499_v11 = vstv %s1320_s0  ;;  %s1373_s4 = sld [smem:[#allocation2 + $0x4d]] }
  0x5d   :  { %v834_v27 = vpop.eup %833  ;;  %847 = vrcp.f32 %v197_v19  ;;  %v248_v60 = vadd.f32 1.0, %v832_v36  ;;  %v435_v30 = vadd.f32 %v433_v16, %v430_v34  ;;  %v436_v37 = vadd.f32 %v434_v0, %v431_v35  ;;  %s1379_s5 = sld [smem:[#allocation2 + $0x4e]] }
  0x5e   :  { %v836_v61 = vpop.eup %835  ;;  %849 = vrcp.f32 %v247_v26  ;;  %v298_v38 = vadd.f32 1.0, %v834_v27  ;;  %v473_v14 = vstv %s1314_s15  ;;  %v504_v2 = vstv %s1322_s19  ;;  %s1381_s6 = sld [smem:[#allocation2 + $0x4f]] }
  0x5f   :  { %v838_v40 = vpop.eup %837  ;;  %851 = vrcp.f32 %v248_v60  ;;  %v299_v31 = vadd.f32 1.0, %v836_v61  ;;  %v440_v41 = vadd.f32 %v438_v20, %v435_v30  ;;  %v441_v50 = vadd.f32 %v439_v1, %v436_v37  ;;  %s1383_s7 = sld [smem:[#allocation2 + $0x50]] }
  0x60   :  { %853 = vrcp.f32 %v298_v38  ;;  %v349_v44 = vadd.f32 1.0, %v838_v40  ;;  %v509_v3 = vstv %s1324_s20  ;;  %v514_v9 = vstv %s1327_s17  ;;  %s1387_s8 = sld [smem:[#allocation2 + $0x51]] }
  0x61   :  { %v443_v51 = vadd.f32 %v442_v39, %v440_v41  ;;  %v444_v42 = vadd.f32 %v442_v39, %v441_v50  ;;  %v840_v43 = vpop.eup %839  ;;  %855 = vrcp.f32 %v299_v31  ;;  %v537_v22 = vstv %s1329_s21  ;;  %s1417_s9 = sld [smem:[#allocation2 + $0x52]] }
  0x62   :  { %v350_v48 = vadd.f32 1.0, %v840_v43  ;;  %857 = vrcp.f32 %v349_v44  ;;  %v540_v7 = vstv %s1331_s23  ;;  %v545_v25 = vstv %s1333_s24  ;;  %s1419_s10 = sld [smem:[#allocation2 + $0x53]] }
  0x63   :  { %v445_v45 = vsub.f32 0.0, %v443_v51  ;;  %v446_v46 = vsub.f32 0.0, %v444_v42  ;;  %v842_v47 = vpop.eup %841  ;;  %v578_v28 = vstv %s1337_s26  ;;  %v550_v29 = vstv %s1335_s25  ;;  %s1421_s11 = sld [smem:[#allocation2 + $0x54]] }
  0x64   :  { %v400_v55 = vadd.f32 1.0, %v842_v47  ;;  %v581_v32 = vstv %s1339_s28  ;;  %v586_v16 = vstv %s1341_s29  ;;  %v591_v0 = vstv %s1343_s30  ;;  %s801_s12 = sld [smem:[#allocation2 + $0x56]] }
  0x65   :  { %v447_v49 = vmul.f32 1.442695, %v445_v45  ;;  %v449_v52 = vmul.f32 1.442695, %v446_v46  ;;  %v844_v53 = vpop.eup %843  ;;  %s1423_s13 = sld [smem:[#allocation2 + $0x55]] }
  0x66   :  { %v401_v57 = vadd.f32 1.0, %v844_v53  ;;  %s802_s14 = sld [smem:[#allocation2 + $0x57]] }
  0x67   :  { %859 = vpow2.f32 %v447_v49  ;;  %s1425_s15 = sld [smem:[#allocation2 + $0x58]] }
  0x68   :  { %861 = vpow2.f32 %v449_v52  ;;  %s1427_s16 = sld [smem:[#allocation2 + $0x59]] }
  0x69   :  { %v846_v54 = vpop.eup %845  ;;  %863 = vrcp.f32 %v350_v48  ;;  %s1429_s0 = sld [smem:[#allocation2 + $0x5a]] }
  0x6a   :  { %v848_v56 = vpop.eup %847  ;;  %865 = vrcp.f32 %v400_v55  ;;  %v456_v17 = vmul.f32 %v846_v54, %v455_v58  ;;  %v497_v5 = vmul.f32 %v846_v54, %v496_v10  ;;  %v538_v35 = vmul.f32 %v846_v54, %v537_v22  ;;  %s1431_s19 = sld [smem:[#allocation2 + $0x5b]] }
  0x6b   :  { %v850_v62 = vpop.eup %849  ;;  %867 = vrcp.f32 %v401_v57  ;;  %v457_v8 = vmul.f32 %v848_v56, %v455_v58  ;;  %v498_v20 = vmul.f32 %v848_v56, %v496_v10  ;;  %v579_v1 = vmul.f32 %v846_v54, %v578_v28  ;;  %s807_s20 = sld [smem:[#allocation2 + $0x5c]] }
  0x6c   :  { %v852_v12 = vpop.eup %851  ;;  %v459_v13 = vmul.f32 %v850_v62, %v458_v59  ;;  %v500_v23 = vmul.f32 %v850_v62, %v499_v11  ;;  %v539_v60 = vmul.f32 %v848_v56, %v537_v22  ;;  %v541_v30 = vmul.f32 %v850_v62, %v540_v7  ;;  %s808_s17 = sld [smem:[#allocation2 + $0x5d]] }
  0x6d   :  { %v854_v4 = vpop.eup %853  ;;  %v460_v24 = vmul.f32 %v852_v12, %v458_v59  ;;  %v501_v21 = vmul.f32 %v852_v12, %v499_v11  ;;  %v542_v61 = vmul.f32 %v852_v12, %v540_v7  ;;  %v580_v38 = vmul.f32 %v848_v56, %v578_v28  ;;  %s809_s21 = sld [smem:[#allocation2 + $0x5e]] }
  0x6e   :  { %v856_v15 = vpop.eup %855  ;;  %v461_v33 = vadd.f32 %v459_v13, %v456_v17  ;;  %v464_v18 = vmul.f32 %v854_v4, %v463_v63  ;;  %v502_v19 = vadd.f32 %v500_v23, %v497_v5  ;;  %v505_v34 = vmul.f32 %v854_v4, %v504_v2 }
  0x6f   :  { %v858_v36 = vpop.eup %857  ;;  %v462_v26 = vadd.f32 %v460_v24, %v457_v8  ;;  %v465_v27 = vmul.f32 %v856_v15, %v463_v63  ;;  %v582_v39 = vmul.f32 %v850_v62, %v581_v32  ;;  %v583_v40 = vmul.f32 %v852_v12, %v581_v32 }
  0x70   :  { %v466_v50 = vadd.f32 %v464_v18, %v461_v33  ;;  %v503_v51 = vadd.f32 %v501_v21, %v498_v20  ;;  %v506_v42 = vmul.f32 %v856_v15, %v504_v2  ;;  %v469_v45 = vmul.f32 %v858_v36, %v468_v6 }
  0x71   :  { %v507_v46 = vadd.f32 %v505_v34, %v502_v19  ;;  %v510_v47 = vmul.f32 %v858_v36, %v509_v3  ;;  %v467_v48 = vadd.f32 %v465_v27, %v462_v26  ;;  %v543_v49 = vadd.f32 %v541_v30, %v538_v35 }
  0x72   :  { %v546_v52 = vmul.f32 %v854_v4, %v545_v25  ;;  %v544_v53 = vadd.f32 %v542_v61, %v539_v60  ;;  %v547_v54 = vmul.f32 %v856_v15, %v545_v25  ;;  %v584_v55 = vadd.f32 %v582_v39, %v579_v1 }
  0x73   :  { %v585_v57 = vadd.f32 %v583_v40, %v580_v38  ;;  %v587_v58 = vmul.f32 %v854_v4, %v586_v16  ;;  %v588_v59 = vmul.f32 %v856_v15, %v586_v16  ;;  %v508_v63 = vadd.f32 %v506_v42, %v503_v51 }
  0x74   :  { %v860_v37 = vpop.eup %859  ;;  %v555_v11 = vstv %s1363_s3  ;;  %v596_v12 = vstv %s1365_s18  ;;  %v548_v17 = vadd.f32 %v546_v52, %v543_v49  ;;  %v592_v22 = vmul.f32 %v858_v36, %v591_v0 }
  0x75   :  { %v862_v31 = vpop.eup %861  ;;  %v451_v41 = vadd.f32 1.0, %v860_v37  ;;  %v589_v13 = vadd.f32 %v587_v58, %v584_v55  ;;  %v549_v4 = vadd.f32 %v547_v54, %v544_v53  ;;  %v590_v23 = vadd.f32 %v588_v59, %v585_v57 }
  0x76   :  { %v864_v43 = vpop.eup %863  ;;  %v452_v44 = vadd.f32 1.0, %v862_v31  ;;  %v471_v8 = vadd.f32 %v469_v45, %v466_v50  ;;  %v512_v25 = vadd.f32 %v510_v47, %v507_v46  ;;  %v478_v35 = vstv %s1367_s22 }
  0x77   :  { %869 = vrcp.f32 %v451_v41  ;;  %v470_v56 = vmul.f32 %v864_v43, %v468_v6  ;;  %v866_v62 = vpop.eup %865  ;;  %v511_v10 = vmul.f32 %v864_v43, %v509_v3  ;;  %v551_v6 = vmul.f32 %v858_v36, %v550_v29 }
  0x78   :  { %871 = vrcp.f32 %v452_v44  ;;  %v868_v2 = vpop.eup %867  ;;  %v552_v5 = vmul.f32 %v864_v43, %v550_v29  ;;  %v593_v7 = vmul.f32 %v864_v43, %v591_v0  ;;  %v474_v24 = vmul.f32 %v866_v62, %v473_v14 }
  0x79   :  { %v472_v3 = vadd.f32 %v470_v56, %v467_v48  ;;  %v475_v28 = vmul.f32 %v868_v2, %v473_v14  ;;  %v513_v15 = vadd.f32 %v511_v10, %v508_v63  ;;  %v515_v32 = vmul.f32 %v866_v62, %v514_v9 }
  0x7a   :  { %v516_v29 = vmul.f32 %v868_v2, %v514_v9  ;;  %v553_v16 = vadd.f32 %v551_v6, %v548_v17  ;;  %v556_v0 = vmul.f32 %v866_v62, %v555_v11  ;;  %v594_v33 = vadd.f32 %v592_v22, %v589_v13 }
  0x7b   :  { %v597_v18 = vmul.f32 %v866_v62, %v596_v12  ;;  %v554_v20 = vadd.f32 %v552_v5, %v549_v4  ;;  %v557_v21 = vmul.f32 %v868_v2, %v555_v11  ;;  %v595_v19 = vadd.f32 %v593_v7, %v590_v23 }
  0x7c   :  { %v598_v34 = vmul.f32 %v868_v2, %v596_v12  ;;  %v483_v1 = vstv %s1379_s5  ;;  %v519_v14 = vstv %s1369_s1  ;;  %v524_v36 = vstv %s1381_s6 }
  0x7d   :  { %v560_v26 = vstv %s1371_s27  ;;  %v565_v27 = vstv %s1383_s7  ;;  %v601_v60 = vstv %s1373_s4  ;;  %v606_v30 = vstv %s1387_s8 }
  0x7e   :  { %v476_v37 = vadd.f32 %v474_v24, %v471_v8  ;;  %v517_v61 = vadd.f32 %v515_v32, %v512_v25  ;;  %v558_v9 = vadd.f32 %v556_v0, %v553_v16  ;;  %v599_v38 = vadd.f32 %v597_v18, %v594_v33 }
  0x7f   :  { %v477_v40 = vadd.f32 %v475_v28, %v472_v3  ;;  %v518_v31 = vadd.f32 %v516_v29, %v513_v15  ;;  %v559_v41 = vadd.f32 %v557_v21, %v554_v20  ;;  %v600_v50 = vadd.f32 %v598_v34, %v595_v19 }
  0x84   :  { %v870_v39 = vpop.eup %869 }
  0x85   :  { %v872_v51 = vpop.eup %871  ;;  %v479_v42 = vmul.f32 %v870_v39, %v478_v35  ;;  %v520_v43 = vmul.f32 %v870_v39, %v519_v14  ;;  %v561_v44 = vmul.f32 %v870_v39, %v560_v26  ;;  %v602_v45 = vmul.f32 %v870_v39, %v601_v60 }
  0x86   :  { %v480_v46 = vmul.f32 %v872_v51, %v478_v35  ;;  %v521_v47 = vmul.f32 %v872_v51, %v519_v14  ;;  %v562_v48 = vmul.f32 %v872_v51, %v560_v26  ;;  %v603_v49 = vmul.f32 %v872_v51, %v601_v60 }
  0x87   :  { %v481_v52 = vadd.f32 %v479_v42, %v476_v37  ;;  %v522_v53 = vadd.f32 %v520_v43, %v517_v61  ;;  %v563_v54 = vadd.f32 %v561_v44, %v558_v9  ;;  %v604_v55 = vadd.f32 %v602_v45, %v599_v38 }
  0x88   :  { %v482_v56 = vadd.f32 %v480_v46, %v477_v40  ;;  %v523_v57 = vadd.f32 %v521_v47, %v518_v31  ;;  %v564_v58 = vadd.f32 %v562_v48, %v559_v41  ;;  %v605_v59 = vadd.f32 %v603_v49, %v600_v50 }
  0x89   :  { %v484_v62 = vadd.f32 %v483_v1, %v481_v52  ;;  %v525_v63 = vadd.f32 %v524_v36, %v522_v53  ;;  %v566_v10 = vadd.f32 %v565_v27, %v563_v54  ;;  %v607_v11 = vadd.f32 %v606_v30, %v604_v55 }
  0x8a   :  { %v485_v12 = vadd.f32 %v483_v1, %v482_v56  ;;  %v526_v2 = vadd.f32 %v524_v36, %v523_v57  ;;  %v567_v17 = vadd.f32 %v565_v27, %v564_v58  ;;  %v608_v6 = vadd.f32 %v606_v30, %v605_v59 }
  0x8b   :  { %v486_v13 = vsub.f32 0.0, %v484_v62  ;;  %v527_v22 = vsub.f32 0.0, %v525_v63  ;;  %v568_v4 = vsub.f32 0.0, %v566_v10  ;;  %v609_v24 = vsub.f32 0.0, %v607_v11 }
  0x8c   :  { %v487_v5 = vsub.f32 0.0, %v485_v12  ;;  %v528_v23 = vsub.f32 0.0, %v526_v2  ;;  %v569_v7 = vsub.f32 0.0, %v567_v17  ;;  %v610_v15 = vsub.f32 0.0, %v608_v6 }
  0x8d   :  { %v488_v8 = vmul.f32 1.442695, %v486_v13  ;;  %v529_v3 = vmul.f32 1.442695, %v527_v22  ;;  %v570_v32 = vmul.f32 1.442695, %v568_v4  ;;  %v619_v9 = vstv %s1417_s9 }
  0x8e   :  { %v490_v25 = vmul.f32 1.442695, %v487_v5  ;;  %v531_v28 = vmul.f32 1.442695, %v528_v23  ;;  %v572_v29 = vmul.f32 1.442695, %v569_v7  ;;  %v650_v38 = vstv %s801_s12 }
  0x8f   :  { %873 = vpow2.f32 %v488_v8  ;;  %v611_v16 = vmul.f32 1.442695, %v609_v24  ;;  %v613_v0 = vmul.f32 1.442695, %v610_v15  ;;  %v622_v40 = vstv %s1419_s10 }
  0x90   :  { %875 = vpow2.f32 %v490_v25  ;;  %v653_v31 = vstv %s802_s14  ;;  %v627_v44 = vstv %s1421_s11  ;;  %v658_v46 = vstv %s1425_s15 }
  0x91   :  { %877 = vpow2.f32 %v529_v3  ;;  %v632_v49 = vstv %s1423_s13  ;;  %v637_v52 = vstv %s1429_s0  ;;  %v663_v57 = vstv %s1427_s16 }
  0x92   :  { %879 = vpow2.f32 %v531_v28  ;;  %v668_v58 = vstv %s1431_s19 }
  0x93   :  { %881 = vpow2.f32 %v570_v32 }
  0x94   :  { %883 = vpow2.f32 %v572_v29 }
  0x95   :  { %885 = vpow2.f32 %v611_v16 }
  0x96   :  { %887 = vpow2.f32 %v613_v0 }
  0x9c   :  { %v874_v33 = vpop.eup %873 }
  0x9d   :  { %v876_v18 = vpop.eup %875  ;;  %v492_v20 = vadd.f32 1.0, %v874_v33 }
  0x9e   :  { %v878_v21 = vpop.eup %877  ;;  %v493_v19 = vadd.f32 1.0, %v876_v18 }
  0x9f   :  { %v880_v34 = vpop.eup %879  ;;  %889 = vrcp.f32 %v492_v20  ;;  %v533_v35 = vadd.f32 1.0, %v878_v21 }
  0xa0   :  { %v882_v1 = vpop.eup %881  ;;  %891 = vrcp.f32 %v493_v19  ;;  %v534_v14 = vadd.f32 1.0, %v880_v34 }
  0xa1   :  { %v884_v36 = vpop.eup %883  ;;  %893 = vrcp.f32 %v533_v35  ;;  %v574_v26 = vadd.f32 1.0, %v882_v1 }
  0xa2   :  { %v886_v27 = vpop.eup %885  ;;  %895 = vrcp.f32 %v534_v14  ;;  %v575_v60 = vadd.f32 1.0, %v884_v36 }
  0xa3   :  { %v888_v30 = vpop.eup %887  ;;  %897 = vrcp.f32 %v574_v26  ;;  %v615_v37 = vadd.f32 1.0, %v886_v27 }
  0xa4   :  { %899 = vrcp.f32 %v575_v60  ;;  %v616_v61 = vadd.f32 1.0, %v888_v30 }
  0xa5   :  { %901 = vrcp.f32 %v615_v37 }
  0xa6   :  { %903 = vrcp.f32 %v616_v61 }
  0xac   :  { %v890_v39 = vpop.eup %889 }
  0xad   :  { %v892_v41 = vpop.eup %891  ;;  %v620_v50 = vmul.f32 %v890_v39, %v619_v9  ;;  %v651_v51 = vmul.f32 %v890_v39, %v650_v38  ;;  %v681_v39 = vstv %s807_s20 }
  0xae   :  { %v894_v42 = vpop.eup %893  ;;  %v621_v43 = vmul.f32 %v892_v41, %v619_v9  ;;  %v652_v45 = vmul.f32 %v892_v41, %v650_v38 }
  0xaf   :  { %v896_v47 = vpop.eup %895  ;;  %v623_v48 = vmul.f32 %v894_v42, %v622_v40  ;;  %v654_v53 = vmul.f32 %v894_v42, %v653_v31 }
  0xb0   :  { %v898_v54 = vpop.eup %897  ;;  %v624_v55 = vmul.f32 %v896_v47, %v622_v40  ;;  %v655_v56 = vmul.f32 %v896_v47, %v653_v31  ;;  %v684_v31 = vstv %s808_s17 }
  0xb1   :  { %v900_v59 = vpop.eup %899  ;;  %v625_v62 = vadd.f32 %v623_v48, %v620_v50  ;;  %v628_v63 = vmul.f32 %v898_v54, %v627_v44  ;;  %v656_v10 = vadd.f32 %v654_v53, %v651_v51  ;;  %v659_v11 = vmul.f32 %v898_v54, %v658_v46 }
  0xb2   :  { %v902_v12 = vpop.eup %901  ;;  %v626_v2 = vadd.f32 %v624_v55, %v621_v43  ;;  %v629_v17 = vmul.f32 %v900_v59, %v627_v44  ;;  %v657_v6 = vadd.f32 %v655_v56, %v652_v45  ;;  %v660_v13 = vmul.f32 %v900_v59, %v658_v46 }
  0xb3   :  { %v904_v22 = vpop.eup %903  ;;  %v630_v4 = vadd.f32 %v628_v63, %v625_v62  ;;  %v633_v5 = vmul.f32 %v902_v12, %v632_v49  ;;  %v661_v23 = vadd.f32 %v659_v11, %v656_v10  ;;  %v664_v7 = vmul.f32 %v902_v12, %v663_v57 }
  0xb4   :  { %v631_v8 = vadd.f32 %v629_v17, %v626_v2  ;;  %v634_v3 = vmul.f32 %v904_v22, %v632_v49  ;;  %v662_v24 = vadd.f32 %v660_v13, %v657_v6  ;;  %v665_v25 = vmul.f32 %v904_v22, %v663_v57 }
  0xb5   :  { %v635_v28 = vadd.f32 %v633_v5, %v630_v4  ;;  %v666_v15 = vadd.f32 %v664_v7, %v661_v23  ;;  %v689_v46 = vstv %s809_s21 }
  0xb6   :  { %v636_v32 = vadd.f32 %v634_v3, %v631_v8  ;;  %v667_v29 = vadd.f32 %v665_v25, %v662_v24 }
  0xb7   :  { %v638_v16 = vadd.f32 %v637_v52, %v635_v28  ;;  %v669_v0 = vadd.f32 %v668_v58, %v666_v15 }
  0xb8   :  { %v639_v33 = vadd.f32 %v637_v52, %v636_v32  ;;  %v670_v18 = vadd.f32 %v668_v58, %v667_v29 }
  0xb9   :  { %v640_v20 = vsub.f32 0.0, %v638_v16  ;;  %v671_v21 = vsub.f32 0.0, %v669_v0 }
  0xba   :  { %v641_v19 = vsub.f32 0.0, %v639_v33  ;;  %v672_v34 = vsub.f32 0.0, %v670_v18 }
  0xbb   :  { %v642_v35 = vmul.f32 1.442695, %v640_v20  ;;  %v673_v1 = vmul.f32 1.442695, %v671_v21 }
  0xbc   :  { %v644_v14 = vmul.f32 1.442695, %v641_v19  ;;  %v675_v36 = vmul.f32 1.442695, %v672_v34 }
  0xbd   :  { %905 = vpow2.f32 %v642_v35 }
  0xbe   :  { %907 = vpow2.f32 %v644_v14 }
  0xbf   :  { %909 = vpow2.f32 %v673_v1 }
  0xc0   :  { %911 = vpow2.f32 %v675_v36 }
  0xca   :  { %v906_v26 = vpop.eup %905 }
  0xcb   :  { %v908_v27 = vpop.eup %907  ;;  %v646_v60 = vadd.f32 1.0, %v906_v26 }
  0xcc   :  { %v910_v30 = vpop.eup %909  ;;  %v647_v37 = vadd.f32 1.0, %v908_v27 }
  0xcd   :  { %v912_v61 = vpop.eup %911  ;;  %913 = vrcp.f32 %v646_v60  ;;  %v677_v9 = vadd.f32 1.0, %v910_v30 }
  0xce   :  { %915 = vrcp.f32 %v647_v37  ;;  %v678_v38 = vadd.f32 1.0, %v912_v61 }
  0xcf   :  { %917 = vrcp.f32 %v677_v9 }
  0xd0   :  { %919 = vrcp.f32 %v678_v38 }
  0xda   :  { %v914_v40 = vpop.eup %913 }
  0xdb   :  { %v916_v41 = vpop.eup %915  ;;  %v682_v50 = vmul.f32 %v914_v40, %v681_v39 }
  0xdc   :  { %v918_v51 = vpop.eup %917  ;;  %v683_v42 = vmul.f32 %v916_v41, %v681_v39 }
  0xdd   :  { %v920_v43 = vpop.eup %919  ;;  %v685_v44 = vmul.f32 %v918_v51, %v684_v31 }
  0xde   :  { %v686_v45 = vmul.f32 %v920_v43, %v684_v31 }
  0xdf   :  { %v687_v47 = vadd.f32 %v685_v44, %v682_v50 }
  0xe0   :  { %v688_v48 = vadd.f32 %v686_v45, %v683_v42 }
  0xe1   :  { %v690_v49 = vadd.f32 %v689_v46, %v687_v47 }
  0xe2   :  { %v691_v52 = vadd.f32 %v689_v46, %v688_v48 }
  0xe3   :  { %v692_v53 = vsub.f32 0.0, %v690_v49 }
  0xe4   :  { %v693_v54 = vsub.f32 0.0, %v691_v52 }
  0xe5   :  { %v694_v55 = vmul.f32 1.442695, %v692_v53 }
  0xe6   :  { %v696_v56 = vmul.f32 1.442695, %v693_v54 }
  0xe7   :  { %921 = vpow2.f32 %v694_v55 }
  0xe8   :  { %923 = vpow2.f32 %v696_v56 }
  0xf4   :  { %v922_v57 = vpop.eup %921 }
  0xf5   :  { %v924_v58 = vpop.eup %923  ;;  %v698_v59 = vadd.f32 1.0, %v922_v57 }
  0xf6   :  { %v699_v62 = vadd.f32 1.0, %v924_v58 }
  0xf7   :  { %925 = vrcp.f32 %v698_v59 }
  0xf8   :  { %927 = vrcp.f32 %v699_v62 }
 0x104   :  { %v926_v63 = vpop.eup %925 }
 0x105   :  { %v928_v10 = vpop.eup %927  ;;  %702 = vst [vmem:[%s1449_s2] sm:$0xff] %v926_v63 }
 0x106   :  { %703 = vst [vmem:[%s1449_s2 + $0x8] sm:$0xff] %v928_v10 }
 0x107   :  { %708 = vsyncpa [#allocation3], 1 }

</bundles_post_ra>
